<compile_context>
chip_gen: v7x
topology: tpu7x:2x2x1
jax: 0.10.0
libtpu: 0.0.40
codegen_flags: <defaults>
</compile_context>

<pallas_src>
import math
import functools

import jax
import jax.numpy as jnp
import numpy as np
from jax.experimental import pallas as pl
from jax.experimental.pallas import tpu as pltpu


def bert_layer_kernel(resw_ref,                          # scalar prefetch (SMEM)
                      xq_ref, xfull_ref, mask_ref,
                      wq_ref, bq_ref, wkv_ref, bkv_ref,
                      wo_ref, bo_ref, w1_ref, b1_ref, w2_ref, b2_ref,
                      out_ref,
                      kv_scr, ctx_scr,
                      *, num_heads, head_dim):
    qi = pl.program_id(1)
    H = num_heads * head_dim
    S = kv_scr.shape[0]
    resw = resw_ref[0]

    # --- K/V projection: once per batch-element slab, reused by every q tile ---
    @pl.when(qi == 0)
    def _():
        x_full = xfull_ref[0].astype(jnp.bfloat16)                    # (S, H)
        kv = jnp.dot(x_full, wkv_ref[...],
                     preferred_element_type=jnp.float32) + bkv_ref[...]
        kv_scr[...] = kv.astype(jnp.bfloat16)                         # (S, 2H) bf16

    # --- Q projection for this query tile (softmax scale pre-folded into wq/bq) ---
    x_q = xq_ref[0]                                                   # (TQ, H) f32
    q = (jnp.dot(x_q.astype(jnp.bfloat16), wq_ref[...],
                 preferred_element_type=jnp.float32) + bq_ref[...]
         ).astype(jnp.bfloat16)                                       # single bf16 cast

    tq = x_q.shape[0]
    mask_b = jnp.broadcast_to(mask_ref[0], (tq, S))                   # hoisted out of head loop

    # --- per-head attention; head outputs written directly into ctx scratch ---
    # TODO(synk): for head_dim=64 production configs, repack weights so per-head
    # slices are 128-lane aligned (pad head_dim to 128) to avoid relayout copies.
    for h in range(num_heads):
        lo = h * head_dim
        qh = q[:, lo:lo + head_dim]                                   # (TQ, hd) bf16
        kh = kv_scr[:, lo:lo + head_dim]                              # (S, hd)  bf16
        vh = kv_scr[:, H + lo:H + lo + head_dim]                      # (S, hd)  bf16
        s = jax.lax.dot_general(qh, kh, (((1,), (1,)), ((), ())),
                                preferred_element_type=jnp.float32)   # (TQ, S) f32
        s = s + mask_b
        s = s - jnp.max(s, axis=-1, keepdims=True)
        p = jnp.exp(s)
        p = p * pl.reciprocal(jnp.sum(p, axis=-1, keepdims=True), approx=True)
        ctx_scr[:, lo:lo + head_dim] = jnp.dot(p.astype(jnp.bfloat16), vh,
                                               preferred_element_type=jnp.float32)

    # --- output dense + ReZero residual #1 (dropout1 == identity in eval) ---
    attn = jnp.dot(ctx_scr[...].astype(jnp.bfloat16), wo_ref[...],
                   preferred_element_type=jnp.float32) + bo_ref[...]
    src = x_q + resw * attn

    # --- feed-forward: linear1 -> gelu(tanh approx) -> linear2, bf16 MXU / f32 acc ---
    h1 = jnp.dot(src.astype(jnp.bfloat16), w1_ref[...],
                 preferred_element_type=jnp.float32) + b1_ref[...]
    # TODO(synk): compute this polynomial in bf16 on v6e/v7x (keep f32 on v5e).
    h1 = 0.5 * h1 * (1.0 + jnp.tanh(0.7978845608028654 *
                                    (h1 + 0.044715 * h1 * h1 * h1)))
    ffn = jnp.dot(h1.astype(jnp.bfloat16), w2_ref[...],
                  preferred_element_type=jnp.float32) + b2_ref[...]

    # --- ReZero residual #2 (dropout2 == identity in eval) ---
    out_ref[0] = (src + resw * ffn).astype(out_ref.dtype)


def bert_layer(x, mask, kparams, *, num_heads, q_tile=128):
    """kparams = (wq_bf16[scale folded], bq(1,H), wkv_bf16(H,2H), bkv(1,2H),
                  wo_bf16, bo(1,H), w1_bf16, b1(1,I), w2_bf16, b2(1,H), resw(1,))."""
    B, S, H = x.shape
    head_dim = H // num_heads
    (wq, bq, wkv, bkv, wo, bo, w1, b1, w2, b2, resw) = kparams
    I = w1.shape[1]
    tq = min(q_tile, S)
    assert S % tq == 0, "sequence length must be divisible by the query tile"
    nq = S // tq

    def rep_spec(a):
        # Grid-invariant weights: full-array block, same tile every grid step.
        # Single-buffer them (never re-fetched; halves weight VMEM, key on v7x).
        nd = a.ndim
        idx = lambda b, q, _resw, _nd=nd: (0,) * _nd
        try:
            return pl.BlockSpec(a.shape, idx, pipeline_mode=pl.Buffered(1))
        except (TypeError, AttributeError):   # fallback if pipeline_mode unsupported
            return pl.BlockSpec(a.shape, idx)

    kernel = functools.partial(bert_layer_kernel,
                               num_heads=num_heads, head_dim=head_dim)

    grid_spec = pltpu.PrefetchScalarGridSpec(
        num_scalar_prefetch=1,                 # resweight scalar -> SMEM
        grid=(B, nq),
        in_specs=[
            pl.BlockSpec((1, tq, H), lambda b, q, _r: (b, q, 0)),   # x: query tile
            pl.BlockSpec((1, S, H), lambda b, q, _r: (b, 0, 0)),    # x: full slab (K/V)
            pl.BlockSpec((1, 1, S), lambda b, q, _r: (b, 0, 0)),    # additive mask
            rep_spec(wq), rep_spec(bq), rep_spec(wkv), rep_spec(bkv),
            rep_spec(wo), rep_spec(bo), rep_spec(w1), rep_spec(b1),
            rep_spec(w2), rep_spec(b2),
        ],
        out_specs=pl.BlockSpec((1, tq, H), lambda b, q, _r: (b, q, 0)),
        scratch_shapes=[
            pltpu.VMEM((S, 2 * H), jnp.bfloat16),   # K|V for current slab (persists across q tiles)
            pltpu.VMEM((tq, H), jnp.float32),       # per-tile head-context accumulator
        ],
    )

    # Explicit VMEM budget from the actual buffer sizes (weights single-buffered,
    # x/out tiles double-buffered, f32 per-tile intermediates) + headroom; capped
    # at 64 MiB so it also fits v7x physical VMEM (raise toward ~100 MB on v5e/v6e).
    weight_bytes = sum(int(a.size) * a.dtype.itemsize
                       for a in (wq, bq, wkv, bkv, wo, bo, w1, b1, w2, b2))
    act_bytes = (4 * (2 * tq * H + 2 * tq * H + 2 * S * H            # x/out tiles, x slab (2-buf)
                      + tq * (2 * H + S + I + 3 * H))                # q, scores, h1, src/attn/ffn
                 + 2 * S * 2 * H + 4 * S * 2 * H)                    # kv scratch + kv f32 temp
    vmem_limit = int(min(max(weight_bytes + 2 * act_bytes + (8 << 20), 32 << 20),
                         64 << 20))

    return pl.pallas_call(
        kernel,
        out_shape=jax.ShapeDtypeStruct((B, S, H), x.dtype),
        grid_spec=grid_spec,
        compiler_params=pltpu.CompilerParams(
            dimension_semantics=("parallel", "arbitrary"),
            vmem_limit_bytes=vmem_limit),
    )(resw, x, x, mask, wq, bq, wkv, bkv, wo, bo, w1, b1, w2, b2)


def bert_layer_ref(x, mask, params, *, num_heads):
    """Pure-JAX fp32 reference with identical math (BERT head splitting)."""
    (wq, bq, wk, bk, wv, bv, wo, bo, w1, b1, w2, b2, resw) = params
    B, S, H = x.shape
    hd = H // num_heads
    scale = 1.0 / math.sqrt(hd)

    def split(t):  # (B,S,H) -> (B,nh,S,hd)
        return t.reshape(B, S, num_heads, hd).transpose(0, 2, 1, 3)

    q = split(x @ wq + bq)
    k = split(x @ wk + bk)
    v = split(x @ wv + bv)
    s = jnp.einsum('bhqd,bhkd->bhqk', q, k) * scale
    s = s + mask[:, :, None, :]                      # mask (B,1,S) -> (B,1,1,S)
    p = jax.nn.softmax(s, axis=-1)
    c = jnp.einsum('bhqk,bhkd->bhqd', p, v)
    c = c.transpose(0, 2, 1, 3).reshape(B, S, H)
    attn = c @ wo + bo
    src = x + resw * attn
    h1 = src @ w1 + b1
    h1 = 0.5 * h1 * (1.0 + jnp.tanh(0.7978845608028654 *
                                    (h1 + 0.044715 * h1 ** 3)))
    ffn = h1 @ w2 + b2
    return src + resw * ffn


if __name__ == "__main__":
    B, S, H = 2, 16, 32
    num_heads, intermediate = 4, 64
    hd = H // num_heads

    key = jax.random.PRNGKey(0)
    ks = jax.random.split(key, 16)

    def init(k, shape, scale=0.02):
        return (scale * jax.random.normal(k, shape)).astype(jnp.float32)

    wq = init(ks[0], (H, H)); bq = init(ks[1], (H,))
    wk = init(ks[2], (H, H)); bk = init(ks[3], (H,))
    wv = init(ks[4], (H, H)); bv = init(ks[5], (H,))
    wo = init(ks[6], (H, H)); bo = init(ks[7], (H,))
    w1 = init(ks[8], (H, intermediate)); b1 = init(ks[9], (intermediate,))
    w2 = init(ks[10], (intermediate, H)); b2 = init(ks[11], (H,))
    # module __init__ sets resweight = 0 (identity layer); use 0.5 so the test
    # exercises the full compute path.
    resw_val = 0.5

    x = jax.random.normal(ks[12], (B, S, H), dtype=jnp.float32)
    # non-trivial additive attention mask (0 .. -2) to exercise the mask path
    mask = (-2.0 * jax.random.uniform(ks[13], (B, 1, S))).astype(jnp.float32)

    # --- kernel-side parameter packing: scale folded into Q, bf16 MXU weights ---
    scale = 1.0 / math.sqrt(hd)
    kparams = (
        (wq * scale).astype(jnp.bfloat16), (bq * scale).reshape(1, H),
        jnp.concatenate([wk, wv], axis=1).astype(jnp.bfloat16),     # (H, 2H)
        jnp.concatenate([bk, bv]).reshape(1, 2 * H),
        wo.astype(jnp.bfloat16), bo.reshape(1, H),
        w1.astype(jnp.bfloat16), b1.reshape(1, intermediate),
        w2.astype(jnp.bfloat16), b2.reshape(1, H),
        jnp.full((1,), resw_val, dtype=jnp.float32),
    )

    # q_tile=8 with S=16 -> 2 query tiles per batch element (exercises both the
    # "compute K/V" first tile and the "reuse K/V scratch" second tile).
    out = bert_layer(x, mask, kparams, num_heads=num_heads, q_tile=8)
    out = jax.block_until_ready(out)

    ref_params = (wq, bq, wk, bk, wv, bv, wo, bo, w1, b1, w2, b2, resw_val)
    ref = bert_layer_ref(x, mask, ref_params, num_heads=num_heads)

    # bf16 MXU inputs + approx reciprocal vs fp32 reference -> ~1e-3 abs error.
    np.testing.assert_allclose(np.asarray(out), np.asarray(ref),
                               rtol=1e-2, atol=1e-2)
    print("KERNEL_OK")
</pallas_src>

<mosaic_0001>
module attributes {stable_mosaic.version = 11 : i64} {
  func.func @bert_layer_kernel(%arg0: i32, %arg1: i32, %arg2: memref<1xf32, #tpu.memory_space<smem>>, %arg3: memref<1x8x32xf32, #tpu.memory_space<vmem>>, %arg4: memref<1x16x32xf32, #tpu.memory_space<vmem>>, %arg5: memref<1x1x16xf32, #tpu.memory_space<vmem>>, %arg6: memref<32x32xbf16, #tpu.memory_space<vmem>>, %arg7: memref<1x32xf32, #tpu.memory_space<vmem>>, %arg8: memref<32x64xbf16, #tpu.memory_space<vmem>>, %arg9: memref<1x64xf32, #tpu.memory_space<vmem>>, %arg10: memref<32x32xbf16, #tpu.memory_space<vmem>>, %arg11: memref<1x32xf32, #tpu.memory_space<vmem>>, %arg12: memref<32x64xbf16, #tpu.memory_space<vmem>>, %arg13: memref<1x64xf32, #tpu.memory_space<vmem>>, %arg14: memref<64x32xbf16, #tpu.memory_space<vmem>>, %arg15: memref<1x32xf32, #tpu.memory_space<vmem>>, %arg16: memref<1x8x32xf32, #tpu.memory_space<vmem>>, %arg17: memref<16x64xbf16, #tpu.memory_space<vmem>>, %arg18: memref<8x32xf32, #tpu.memory_space<vmem>>) attributes {dimension_semantics = [#tpu.dimension_semantics<parallel>, #tpu.dimension_semantics<arbitrary>], iteration_bounds = array<i64: 2, 2>, scalar_prefetch = 1 : i64, scratch_operands = 2 : i64, tpu.core_type = #tpu.core_type<tc>, window_params = [{transform_indices = @transform_0, window_bounds = array<i64: 1, 8, 32>}, {transform_indices = @transform_1, window_bounds = array<i64: 1, 16, 32>}, {transform_indices = @transform_2, window_bounds = array<i64: 1, 1, 16>}, {pipeline_mode = #tpu.pipeline_mode<synchronous>, transform_indices = @transform_3, window_bounds = array<i64: 32, 32>}, {pipeline_mode = #tpu.pipeline_mode<synchronous>, transform_indices = @transform_4, window_bounds = array<i64: 1, 32>}, {pipeline_mode = #tpu.pipeline_mode<synchronous>, transform_indices = @transform_5, window_bounds = array<i64: 32, 64>}, {pipeline_mode = #tpu.pipeline_mode<synchronous>, transform_indices = @transform_6, window_bounds = array<i64: 1, 64>}, {pipeline_mode = #tpu.pipeline_mode<synchronous>, transform_indices = @transform_7, window_bounds = array<i64: 32, 32>}, {pipeline_mode = #tpu.pipeline_mode<synchronous>, transform_indices = @transform_8, window_bounds = array<i64: 1, 32>}, {pipeline_mode = #tpu.pipeline_mode<synchronous>, transform_indices = @transform_9, window_bounds = array<i64: 32, 64>}, {pipeline_mode = #tpu.pipeline_mode<synchronous>, transform_indices = @transform_10, window_bounds = array<i64: 1, 64>}, {pipeline_mode = #tpu.pipeline_mode<synchronous>, transform_indices = @transform_11, window_bounds = array<i64: 64, 32>}, {pipeline_mode = #tpu.pipeline_mode<synchronous>, transform_indices = @transform_12, window_bounds = array<i64: 1, 32>}, {transform_indices = @transform_13, window_bounds = array<i64: 1, 8, 32>}]} {
    %c0 = arith.constant 0 : index
    %0 = memref.load %arg2[%c0] : memref<1xf32, #tpu.memory_space<smem>>
    %c0_i32 = arith.constant 0 : i32
    %1 = arith.cmpi eq, %arg1, %c0_i32 : i32
    %2 = arith.extui %1 : i1 to i32
    %c0_i32_0 = arith.constant 0 : i32
    %3 = arith.cmpi ne, %2, %c0_i32_0 : i32
    scf.if %3 {
      %c0_68 = arith.constant 0 : index
      %c0_69 = arith.constant 0 : index
      %c0_70 = arith.constant 0 : index
      %130 = vector.load %arg4[%c0_68, %c0_69, %c0_70] : memref<1x16x32xf32, #tpu.memory_space<vmem>>, vector<1x16x32xf32>
      %131 = vector.shape_cast %130 : vector<1x16x32xf32> to vector<16x32xf32>
      %132 = arith.truncf %131 : vector<16x32xf32> to vector<16x32xbf16>
      %c0_71 = arith.constant 0 : index
      %c0_72 = arith.constant 0 : index
      %133 = vector.load %arg8[%c0_71, %c0_72] : memref<32x64xbf16, #tpu.memory_space<vmem>>, vector<32x64xbf16>
      %cst_73 = arith.constant dense<0.000000e+00> : vector<16x64xf32>
      %134 = tpu.matmul %132, %133, %cst_73 {dimension_numbers = #tpu.dot_dimension_numbers<[1], [0], [0], [1], [0, 0, 1, 1], [], []>} : vector<16x32xbf16>, vector<32x64xbf16>, vector<16x64xf32> -> vector<16x64xf32>
      %c0_74 = arith.constant 0 : index
      %c0_75 = arith.constant 0 : index
      %135 = vector.load %arg9[%c0_74, %c0_75] : memref<1x64xf32, #tpu.memory_space<vmem>>, vector<1x64xf32>
      %136 = vector.broadcast %135 : vector<1x64xf32> to vector<16x64xf32>
      %137 = arith.addf %134, %136 : vector<16x64xf32>
      %138 = arith.truncf %137 : vector<16x64xf32> to vector<16x64xbf16>
      %c0_76 = arith.constant 0 : index
      %c0_77 = arith.constant 0 : index
      %139 = vector.load %arg17[%c0_76, %c0_77] : memref<16x64xbf16, #tpu.memory_space<vmem>>, vector<16x64xbf16>
      tpu.vector_store %arg17[%c0_76, %c0_77], %138 {strides = array<i32>} : memref<16x64xbf16, #tpu.memory_space<vmem>>, vector<16x64xbf16>,
    } else {
    }
    %c0_1 = arith.constant 0 : index
    %c0_2 = arith.constant 0 : index
    %c0_3 = arith.constant 0 : index
    %4 = vector.load %arg3[%c0_1, %c0_2, %c0_3] : memref<1x8x32xf32, #tpu.memory_space<vmem>>, vector<1x8x32xf32>
    %5 = vector.shape_cast %4 : vector<1x8x32xf32> to vector<8x32xf32>
    %6 = arith.truncf %5 : vector<8x32xf32> to vector<8x32xbf16>
    %c0_4 = arith.constant 0 : index
    %c0_5 = arith.constant 0 : index
    %7 = vector.load %arg6[%c0_4, %c0_5] : memref<32x32xbf16, #tpu.memory_space<vmem>>, vector<32x32xbf16>
    %cst = arith.constant dense<0.000000e+00> : vector<8x32xf32>
    %8 = tpu.matmul %6, %7, %cst {dimension_numbers = #tpu.dot_dimension_numbers<[1], [0], [0], [1], [0, 0, 1, 1], [], []>} : vector<8x32xbf16>, vector<32x32xbf16>, vector<8x32xf32> -> vector<8x32xf32>
    %c0_6 = arith.constant 0 : index
    %c0_7 = arith.constant 0 : index
    %9 = vector.load %arg7[%c0_6, %c0_7] : memref<1x32xf32, #tpu.memory_space<vmem>>, vector<1x32xf32>
    %10 = vector.broadcast %9 : vector<1x32xf32> to vector<8x32xf32>
    %11 = arith.addf %8, %10 : vector<8x32xf32>
    %12 = arith.truncf %11 : vector<8x32xf32> to vector<8x32xbf16>
    %c0_8 = arith.constant 0 : index
    %c0_9 = arith.constant 0 : index
    %c0_10 = arith.constant 0 : index
    %13 = vector.load %arg5[%c0_8, %c0_9, %c0_10] : memref<1x1x16xf32, #tpu.memory_space<vmem>>, vector<1x1x16xf32>
    %14 = vector.shape_cast %13 : vector<1x1x16xf32> to vector<1x16xf32>
    %15 = vector.shape_cast %14 : vector<1x16xf32> to vector<1x16xf32>
    %16 = vector.broadcast %15 : vector<1x16xf32> to vector<8x16xf32>
    %17 = vector.extract_strided_slice %12 {offsets = [0, 0], sizes = [8, 8], strides = [1, 1]} : vector<8x32xbf16> to vector<8x8xbf16>
    %c0_11 = arith.constant 0 : index
    %c0_12 = arith.constant 0 : index
    %18 = vector.load %arg17[%c0_11, %c0_12] : memref<16x64xbf16, #tpu.memory_space<vmem>>, vector<16x8xbf16>
    %c0_13 = arith.constant 0 : index
    %c32 = arith.constant 32 : index
    %19 = vector.load %arg17[%c0_13, %c32] : memref<16x64xbf16, #tpu.memory_space<vmem>>, vector<16x8xbf16>
    %cst_14 = arith.constant dense<0.000000e+00> : vector<8x16xf32>
    %20 = tpu.matmul %17, %18, %cst_14 {dimension_numbers = #tpu.dot_dimension_numbers<[1], [1], [0], [0], [0, 0, 1, 0], [], []>} : vector<8x8xbf16>, vector<16x8xbf16>, vector<8x16xf32> -> vector<8x16xf32>
    %21 = arith.addf %20, %16 : vector<8x16xf32>
    %cst_15 = arith.constant dense<0xFF800000> : vector<8xf32>
    %22 = vector.multi_reduction <maximumf>, %21, %cst_15 [1] : vector<8x16xf32> to vector<8xf32>
    %23 = vector.shape_cast %22 : vector<8xf32> to vector<8x1xf32>
    %24 = vector.broadcast %23 : vector<8x1xf32> to vector<8x16xf32>
    %25 = arith.subf %21, %24 : vector<8x16xf32>
    %26 = math.exp %25 : vector<8x16xf32>
    %cst_16 = arith.constant dense<0.000000e+00> : vector<8xf32>
    %27 = vector.multi_reduction <add>, %26, %cst_16 [1] : vector<8x16xf32> to vector<8xf32>
    %28 = vector.shape_cast %27 : vector<8xf32> to vector<8x1xf32>
    %29 = tpu.reciprocal %28 {approx = true} : vector<8x1xf32> -> vector<8x1xf32>
    %30 = vector.broadcast %29 : vector<8x1xf32> to vector<8x16xf32>
    %31 = arith.mulf %26, %30 : vector<8x16xf32>
    %32 = arith.truncf %31 : vector<8x16xf32> to vector<8x16xbf16>
    %cst_17 = arith.constant dense<0.000000e+00> : vector<8x8xf32>
    %33 = tpu.matmul %32, %19, %cst_17 {dimension_numbers = #tpu.dot_dimension_numbers<[1], [0], [0], [1], [0, 0, 1, 1], [], []>} : vector<8x16xbf16>, vector<16x8xbf16>, vector<8x8xf32> -> vector<8x8xf32>
    %c0_18 = arith.constant 0 : index
    %c0_19 = arith.constant 0 : index
    %34 = vector.load %arg18[%c0_18, %c0_19] : memref<8x32xf32, #tpu.memory_space<vmem>>, vector<8x8xf32>
    tpu.vector_store %arg18[%c0_18, %c0_19], %33 {strides = array<i32>} : memref<8x32xf32, #tpu.memory_space<vmem>>, vector<8x8xf32>,
    %35 = vector.extract_strided_slice %12 {offsets = [0, 8], sizes = [8, 8], strides = [1, 1]} : vector<8x32xbf16> to vector<8x8xbf16>
    %c0_20 = arith.constant 0 : index
    %c8 = arith.constant 8 : index
    %36 = vector.load %arg17[%c0_20, %c8] : memref<16x64xbf16, #tpu.memory_space<vmem>>, vector<16x8xbf16>
    %c0_21 = arith.constant 0 : index
    %c40 = arith.constant 40 : index
    %37 = vector.load %arg17[%c0_21, %c40] : memref<16x64xbf16, #tpu.memory_space<vmem>>, vector<16x8xbf16>
    %cst_22 = arith.constant dense<0.000000e+00> : vector<8x16xf32>
    %38 = tpu.matmul %35, %36, %cst_22 {dimension_numbers = #tpu.dot_dimension_numbers<[1], [1], [0], [0], [0, 0, 1, 0], [], []>} : vector<8x8xbf16>, vector<16x8xbf16>, vector<8x16xf32> -> vector<8x16xf32>
    %39 = arith.addf %38, %16 : vector<8x16xf32>
    %cst_23 = arith.constant dense<0xFF800000> : vector<8xf32>
    %40 = vector.multi_reduction <maximumf>, %39, %cst_23 [1] : vector<8x16xf32> to vector<8xf32>
    %41 = vector.shape_cast %40 : vector<8xf32> to vector<8x1xf32>
    %42 = vector.broadcast %41 : vector<8x1xf32> to vector<8x16xf32>
    %43 = arith.subf %39, %42 : vector<8x16xf32>
    %44 = math.exp %43 : vector<8x16xf32>
    %cst_24 = arith.constant dense<0.000000e+00> : vector<8xf32>
    %45 = vector.multi_reduction <add>, %44, %cst_24 [1] : vector<8x16xf32> to vector<8xf32>
    %46 = vector.shape_cast %45 : vector<8xf32> to vector<8x1xf32>
    %47 = tpu.reciprocal %46 {approx = true} : vector<8x1xf32> -> vector<8x1xf32>
    %48 = vector.broadcast %47 : vector<8x1xf32> to vector<8x16xf32>
    %49 = arith.mulf %44, %48 : vector<8x16xf32>
    %50 = arith.truncf %49 : vector<8x16xf32> to vector<8x16xbf16>
    %cst_25 = arith.constant dense<0.000000e+00> : vector<8x8xf32>
    %51 = tpu.matmul %50, %37, %cst_25 {dimension_numbers = #tpu.dot_dimension_numbers<[1], [0], [0], [1], [0, 0, 1, 1], [], []>} : vector<8x16xbf16>, vector<16x8xbf16>, vector<8x8xf32> -> vector<8x8xf32>
    %c0_26 = arith.constant 0 : index
    %c8_27 = arith.constant 8 : index
    %52 = vector.load %arg18[%c0_26, %c8_27] : memref<8x32xf32, #tpu.memory_space<vmem>>, vector<8x8xf32>
    tpu.vector_store %arg18[%c0_26, %c8_27], %51 {strides = array<i32>} : memref<8x32xf32, #tpu.memory_space<vmem>>, vector<8x8xf32>,
    %53 = vector.extract_strided_slice %12 {offsets = [0, 16], sizes = [8, 8], strides = [1, 1]} : vector<8x32xbf16> to vector<8x8xbf16>
    %c0_28 = arith.constant 0 : index
    %c16 = arith.constant 16 : index
    %54 = vector.load %arg17[%c0_28, %c16] : memref<16x64xbf16, #tpu.memory_space<vmem>>, vector<16x8xbf16>
    %c0_29 = arith.constant 0 : index
    %c48 = arith.constant 48 : index
    %55 = vector.load %arg17[%c0_29, %c48] : memref<16x64xbf16, #tpu.memory_space<vmem>>, vector<16x8xbf16>
    %cst_30 = arith.constant dense<0.000000e+00> : vector<8x16xf32>
    %56 = tpu.matmul %53, %54, %cst_30 {dimension_numbers = #tpu.dot_dimension_numbers<[1], [1], [0], [0], [0, 0, 1, 0], [], []>} : vector<8x8xbf16>, vector<16x8xbf16>, vector<8x16xf32> -> vector<8x16xf32>
    %57 = arith.addf %56, %16 : vector<8x16xf32>
    %cst_31 = arith.constant dense<0xFF800000> : vector<8xf32>
    %58 = vector.multi_reduction <maximumf>, %57, %cst_31 [1] : vector<8x16xf32> to vector<8xf32>
    %59 = vector.shape_cast %58 : vector<8xf32> to vector<8x1xf32>
    %60 = vector.broadcast %59 : vector<8x1xf32> to vector<8x16xf32>
    %61 = arith.subf %57, %60 : vector<8x16xf32>
    %62 = math.exp %61 : vector<8x16xf32>
    %cst_32 = arith.constant dense<0.000000e+00> : vector<8xf32>
    %63 = vector.multi_reduction <add>, %62, %cst_32 [1] : vector<8x16xf32> to vector<8xf32>
    %64 = vector.shape_cast %63 : vector<8xf32> to vector<8x1xf32>
    %65 = tpu.reciprocal %64 {approx = true} : vector<8x1xf32> -> vector<8x1xf32>
    %66 = vector.broadcast %65 : vector<8x1xf32> to vector<8x16xf32>
    %67 = arith.mulf %62, %66 : vector<8x16xf32>
    %68 = arith.truncf %67 : vector<8x16xf32> to vector<8x16xbf16>
    %cst_33 = arith.constant dense<0.000000e+00> : vector<8x8xf32>
    %69 = tpu.matmul %68, %55, %cst_33 {dimension_numbers = #tpu.dot_dimension_numbers<[1], [0], [0], [1], [0, 0, 1, 1], [], []>} : vector<8x16xbf16>, vector<16x8xbf16>, vector<8x8xf32> -> vector<8x8xf32>
    %c0_34 = arith.constant 0 : index
    %c16_35 = arith.constant 16 : index
    %70 = vector.load %arg18[%c0_34, %c16_35] : memref<8x32xf32, #tpu.memory_space<vmem>>, vector<8x8xf32>
    tpu.vector_store %arg18[%c0_34, %c16_35], %69 {strides = array<i32>} : memref<8x32xf32, #tpu.memory_space<vmem>>, vector<8x8xf32>,
    %71 = vector.extract_strided_slice %12 {offsets = [0, 24], sizes = [8, 8], strides = [1, 1]} : vector<8x32xbf16> to vector<8x8xbf16>
    %c0_36 = arith.constant 0 : index
    %c24 = arith.constant 24 : index
    %72 = vector.load %arg17[%c0_36, %c24] : memref<16x64xbf16, #tpu.memory_space<vmem>>, vector<16x8xbf16>
    %c0_37 = arith.constant 0 : index
    %c56 = arith.constant 56 : index
    %73 = vector.load %arg17[%c0_37, %c56] : memref<16x64xbf16, #tpu.memory_space<vmem>>, vector<16x8xbf16>
    %cst_38 = arith.constant dense<0.000000e+00> : vector<8x16xf32>
    %74 = tpu.matmul %71, %72, %cst_38 {dimension_numbers = #tpu.dot_dimension_numbers<[1], [1], [0], [0], [0, 0, 1, 0], [], []>} : vector<8x8xbf16>, vector<16x8xbf16>, vector<8x16xf32> -> vector<8x16xf32>
    %75 = arith.addf %74, %16 : vector<8x16xf32>
    %cst_39 = arith.constant dense<0xFF800000> : vector<8xf32>
    %76 = vector.multi_reduction <maximumf>, %75, %cst_39 [1] : vector<8x16xf32> to vector<8xf32>
    %77 = vector.shape_cast %76 : vector<8xf32> to vector<8x1xf32>
    %78 = vector.broadcast %77 : vector<8x1xf32> to vector<8x16xf32>
    %79 = arith.subf %75, %78 : vector<8x16xf32>
    %80 = math.exp %79 : vector<8x16xf32>
    %cst_40 = arith.constant dense<0.000000e+00> : vector<8xf32>
    %81 = vector.multi_reduction <add>, %80, %cst_40 [1] : vector<8x16xf32> to vector<8xf32>
    %82 = vector.shape_cast %81 : vector<8xf32> to vector<8x1xf32>
    %83 = tpu.reciprocal %82 {approx = true} : vector<8x1xf32> -> vector<8x1xf32>
    %84 = vector.broadcast %83 : vector<8x1xf32> to vector<8x16xf32>
    %85 = arith.mulf %80, %84 : vector<8x16xf32>
    %86 = arith.truncf %85 : vector<8x16xf32> to vector<8x16xbf16>
    %cst_41 = arith.constant dense<0.000000e+00> : vector<8x8xf32>
    %87 = tpu.matmul %86, %73, %cst_41 {dimension_numbers = #tpu.dot_dimension_numbers<[1], [0], [0], [1], [0, 0, 1, 1], [], []>} : vector<8x16xbf16>, vector<16x8xbf16>, vector<8x8xf32> -> vector<8x8xf32>
    %c0_42 = arith.constant 0 : index
    %c24_43 = arith.constant 24 : index
    %88 = vector.load %arg18[%c0_42, %c24_43] : memref<8x32xf32, #tpu.memory_space<vmem>>, vector<8x8xf32>
    tpu.vector_store %arg18[%c0_42, %c24_43], %87 {strides = array<i32>} : memref<8x32xf32, #tpu.memory_space<vmem>>, vector<8x8xf32>,
    %c0_44 = arith.constant 0 : index
    %c0_45 = arith.constant 0 : index
    %89 = vector.load %arg18[%c0_44, %c0_45] : memref<8x32xf32, #tpu.memory_space<vmem>>, vector<8x32xf32>
    %90 = arith.truncf %89 : vector<8x32xf32> to vector<8x32xbf16>
    %c0_46 = arith.constant 0 : index
    %c0_47 = arith.constant 0 : index
    %91 = vector.load %arg10[%c0_46, %c0_47] : memref<32x32xbf16, #tpu.memory_space<vmem>>, vector<32x32xbf16>
    %cst_48 = arith.constant dense<0.000000e+00> : vector<8x32xf32>
    %92 = tpu.matmul %90, %91, %cst_48 {dimension_numbers = #tpu.dot_dimension_numbers<[1], [0], [0], [1], [0, 0, 1, 1], [], []>} : vector<8x32xbf16>, vector<32x32xbf16>, vector<8x32xf32> -> vector<8x32xf32>
    %c0_49 = arith.constant 0 : index
    %c0_50 = arith.constant 0 : index
    %93 = vector.load %arg11[%c0_49, %c0_50] : memref<1x32xf32, #tpu.memory_space<vmem>>, vector<1x32xf32>
    %94 = vector.broadcast %93 : vector<1x32xf32> to vector<8x32xf32>
    %95 = arith.addf %92, %94 : vector<8x32xf32>
    %96 = vector.broadcast %0 : f32 to vector<8x32xf32>
    %97 = arith.mulf %96, %95 : vector<8x32xf32>
    %98 = arith.addf %5, %97 : vector<8x32xf32>
    %99 = arith.truncf %98 : vector<8x32xf32> to vector<8x32xbf16>
    %c0_51 = arith.constant 0 : index
    %c0_52 = arith.constant 0 : index
    %100 = vector.load %arg12[%c0_51, %c0_52] : memref<32x64xbf16, #tpu.memory_space<vmem>>, vector<32x64xbf16>
    %cst_53 = arith.constant dense<0.000000e+00> : vector<8x64xf32>
    %101 = tpu.matmul %99, %100, %cst_53 {dimension_numbers = #tpu.dot_dimension_numbers<[1], [0], [0], [1], [0, 0, 1, 1], [], []>} : vector<8x32xbf16>, vector<32x64xbf16>, vector<8x64xf32> -> vector<8x64xf32>
    %c0_54 = arith.constant 0 : index
    %c0_55 = arith.constant 0 : index
    %102 = vector.load %arg13[%c0_54, %c0_55] : memref<1x64xf32, #tpu.memory_space<vmem>>, vector<1x64xf32>
    %103 = vector.broadcast %102 : vector<1x64xf32> to vector<8x64xf32>
    %104 = arith.addf %101, %103 : vector<8x64xf32>
    %cst_56 = arith.constant 5.000000e-01 : f32
    %105 = vector.broadcast %cst_56 : f32 to vector<8x64xf32>
    %106 = arith.mulf %105, %104 : vector<8x64xf32>
    %cst_57 = arith.constant 4.471500e-02 : f32
    %107 = vector.broadcast %cst_57 : f32 to vector<8x64xf32>
    %108 = arith.mulf %107, %104 : vector<8x64xf32>
    %109 = arith.mulf %108, %104 : vector<8x64xf32>
    %110 = arith.mulf %109, %104 : vector<8x64xf32>
    %111 = arith.addf %104, %110 : vector<8x64xf32>
    %cst_58 = arith.constant 0.797884583 : f32
    %112 = vector.broadcast %cst_58 : f32 to vector<8x64xf32>
    %113 = arith.mulf %112, %111 : vector<8x64xf32>
    %114 = math.tanh %113 : vector<8x64xf32>
    %cst_59 = arith.constant 1.000000e+00 : f32
    %115 = vector.broadcast %cst_59 : f32 to vector<8x64xf32>
    %116 = arith.addf %115, %114 : vector<8x64xf32>
    %117 = arith.mulf %106, %116 : vector<8x64xf32>
    %118 = arith.truncf %117 : vector<8x64xf32> to vector<8x64xbf16>
    %c0_60 = arith.constant 0 : index
    %c0_61 = arith.constant 0 : index
    %119 = vector.load %arg14[%c0_60, %c0_61] : memref<64x32xbf16, #tpu.memory_space<vmem>>, vector<64x32xbf16>
    %cst_62 = arith.constant dense<0.000000e+00> : vector<8x32xf32>
    %120 = tpu.matmul %118, %119, %cst_62 {dimension_numbers = #tpu.dot_dimension_numbers<[1], [0], [0], [1], [0, 0, 1, 1], [], []>} : vector<8x64xbf16>, vector<64x32xbf16>, vector<8x32xf32> -> vector<8x32xf32>
    %c0_63 = arith.constant 0 : index
    %c0_64 = arith.constant 0 : index
    %121 = vector.load %arg15[%c0_63, %c0_64] : memref<1x32xf32, #tpu.memory_space<vmem>>, vector<1x32xf32>
    %122 = vector.broadcast %121 : vector<1x32xf32> to vector<8x32xf32>
    %123 = arith.addf %120, %122 : vector<8x32xf32>
    %124 = vector.broadcast %0 : f32 to vector<8x32xf32>
    %125 = arith.mulf %124, %123 : vector<8x32xf32>
    %126 = arith.addf %98, %125 : vector<8x32xf32>
    %c0_65 = arith.constant 0 : index
    %c0_66 = arith.constant 0 : index
    %c0_67 = arith.constant 0 : index
    %127 = vector.load %arg16[%c0_65, %c0_66, %c0_67] : memref<1x8x32xf32, #tpu.memory_space<vmem>>, vector<1x8x32xf32>
    %128 = vector.shape_cast %127 : vector<1x8x32xf32> to vector<8x32xf32>
    %129 = vector.shape_cast %126 : vector<8x32xf32> to vector<1x8x32xf32>
    tpu.vector_store %arg16[%c0_65, %c0_66, %c0_67], %129 {strides = array<i32>} : memref<1x8x32xf32, #tpu.memory_space<vmem>>, vector<1x8x32xf32>,
    return
  }
  func.func @transform_0(%arg0: i32, %arg1: i32, %arg2: memref<1xf32, #tpu.memory_space<smem>>) -> (i32, i32, i32) {
    %c0_i32 = arith.constant 0 : i32
    %c0_i32_0 = arith.constant 0 : i32
    return %arg0, %arg1, %c0_i32 : i32, i32, i32
  }
  func.func @transform_1(%arg0: i32, %arg1: i32, %arg2: memref<1xf32, #tpu.memory_space<smem>>) -> (i32, i32, i32) {
    %c0_i32 = arith.constant 0 : i32
    %c0_i32_0 = arith.constant 0 : i32
    %c0_i32_1 = arith.constant 0 : i32
    return %arg0, %c0_i32, %c0_i32_0 : i32, i32, i32
  }
  func.func @transform_2(%arg0: i32, %arg1: i32, %arg2: memref<1xf32, #tpu.memory_space<smem>>) -> (i32, i32, i32) {
    %c0_i32 = arith.constant 0 : i32
    %c0_i32_0 = arith.constant 0 : i32
    %c0_i32_1 = arith.constant 0 : i32
    return %arg0, %c0_i32, %c0_i32_0 : i32, i32, i32
  }
  func.func @transform_3(%arg0: i32, %arg1: i32, %arg2: memref<1xf32, #tpu.memory_space<smem>>) -> (i32, i32) {
    %c0_i32 = arith.constant 0 : i32
    %c0_i32_0 = arith.constant 0 : i32
    %c0_i32_1 = arith.constant 0 : i32
    return %c0_i32, %c0_i32_0 : i32, i32
  }
  func.func @transform_4(%arg0: i32, %arg1: i32, %arg2: memref<1xf32, #tpu.memory_space<smem>>) -> (i32, i32) {
    %c0_i32 = arith.constant 0 : i32
    %c0_i32_0 = arith.constant 0 : i32
    %c0_i32_1 = arith.constant 0 : i32
    return %c0_i32, %c0_i32_0 : i32, i32
  }
  func.func @transform_5(%arg0: i32, %arg1: i32, %arg2: memref<1xf32, #tpu.memory_space<smem>>) -> (i32, i32) {
    %c0_i32 = arith.constant 0 : i32
    %c0_i32_0 = arith.constant 0 : i32
    %c0_i32_1 = arith.constant 0 : i32
    return %c0_i32, %c0_i32_0 : i32, i32
  }
  func.func @transform_6(%arg0: i32, %arg1: i32, %arg2: memref<1xf32, #tpu.memory_space<smem>>) -> (i32, i32) {
    %c0_i32 = arith.constant 0 : i32
    %c0_i32_0 = arith.constant 0 : i32
    %c0_i32_1 = arith.constant 0 : i32
    return %c0_i32, %c0_i32_0 : i32, i32
  }
  func.func @transform_7(%arg0: i32, %arg1: i32, %arg2: memref<1xf32, #tpu.memory_space<smem>>) -> (i32, i32) {
    %c0_i32 = arith.constant 0 : i32
    %c0_i32_0 = arith.constant 0 : i32
    %c0_i32_1 = arith.constant 0 : i32
    return %c0_i32, %c0_i32_0 : i32, i32
  }
  func.func @transform_8(%arg0: i32, %arg1: i32, %arg2: memref<1xf32, #tpu.memory_space<smem>>) -> (i32, i32) {
    %c0_i32 = arith.constant 0 : i32
    %c0_i32_0 = arith.constant 0 : i32
    %c0_i32_1 = arith.constant 0 : i32
    return %c0_i32, %c0_i32_0 : i32, i32
  }
  func.func @transform_9(%arg0: i32, %arg1: i32, %arg2: memref<1xf32, #tpu.memory_space<smem>>) -> (i32, i32) {
    %c0_i32 = arith.constant 0 : i32
    %c0_i32_0 = arith.constant 0 : i32
    %c0_i32_1 = arith.constant 0 : i32
    return %c0_i32, %c0_i32_0 : i32, i32
  }
  func.func @transform_10(%arg0: i32, %arg1: i32, %arg2: memref<1xf32, #tpu.memory_space<smem>>) -> (i32, i32) {
    %c0_i32 = arith.constant 0 : i32
    %c0_i32_0 = arith.constant 0 : i32
    %c0_i32_1 = arith.constant 0 : i32
    return %c0_i32, %c0_i32_0 : i32, i32
  }
  func.func @transform_11(%arg0: i32, %arg1: i32, %arg2: memref<1xf32, #tpu.memory_space<smem>>) -> (i32, i32) {
    %c0_i32 = arith.constant 0 : i32
    %c0_i32_0 = arith.constant 0 : i32
    %c0_i32_1 = arith.constant 0 : i32
    return %c0_i32, %c0_i32_0 : i32, i32
  }
  func.func @transform_12(%arg0: i32, %arg1: i32, %arg2: memref<1xf32, #tpu.memory_space<smem>>) -> (i32, i32) {
    %c0_i32 = arith.constant 0 : i32
    %c0_i32_0 = arith.constant 0 : i32
    %c0_i32_1 = arith.constant 0 : i32
    return %c0_i32, %c0_i32_0 : i32, i32
  }
  func.func @transform_13(%arg0: i32, %arg1: i32, %arg2: memref<1xf32, #tpu.memory_space<smem>>) -> (i32, i32, i32) {
    %c0_i32 = arith.constant 0 : i32
    %c0_i32_0 = arith.constant 0 : i32
    return %arg0, %arg1, %c0_i32 : i32, i32, i32
  }
}

</mosaic_0001>

<bundles_post_ra>
// kernel: tpu_custom_call.1
= control target key start
LH: loop header
LB: loop body
LE: loop exit
PB: predicated region body
PF: predicated region fallthrough
CT: control target
= control target key end

     0   :  { %s2938_s0 = inlined_call_operand.<no memory space> [shape: f32[1], index: 0, kind: input, shape index: {}]   ;;  %s2939_s1 = inlined_call_operand.vmem [shape: f32[2,16,32], index: 1, kind: input, shape index: {}]   ;;  %s2940_s2 = inlined_call_operand.hbm [shape: f32[2,16,32], index: 2, kind: input, shape index: {}]   ;;  %s2941_s3 = inlined_call_operand.vmem [shape: f32[2,1,16], index: 3, kind: input, shape index: {}]   ;;  %s2942_s4 = inlined_call_operand.vmem [shape: bf16[32,32], index: 4, kind: input, shape index: {}]   ;;  %s2943_s5 = inlined_call_operand.hbm [shape: f32[1,32], index: 5, kind: input, shape index: {}]   ;;  %s2944_s6 = inlined_call_operand.hbm [shape: bf16[32,64], index: 6, kind: input, shape index: {}]   ;;  %s2945_s7 = inlined_call_operand.hbm [shape: f32[1,64], index: 7, kind: input, shape index: {}]   ;;  %s2946_s8 = inlined_call_operand.hbm [shape: bf16[32,32], index: 8, kind: input, shape index: {}]   ;;  %s2947_s9 = inlined_call_operand.hbm [shape: f32[1,32], index: 9, kind: input, shape index: {}]   ;;  %s2948_s10 = inlined_call_operand.vmem [shape: bf16[32,64], index: 10, kind: input, shape index: {}]   ;;  %s2949_s11 = inlined_call_operand.vmem [shape: f32[1,64], index: 11, kind: input, shape index: {}]   ;;  %s2950_s12 = inlined_call_operand.vmem [shape: bf16[64,32], index: 12, kind: input, shape index: {}]   ;;  %s2951_s13 = inlined_call_operand.vmem [shape: f32[1,32], index: 13, kind: input, shape index: {}]   ;;  %s2952_s14 = inlined_call_operand.hbm [shape: f32[2,16,32], index: 14, kind: output, shape index: {}]  }
   0x1   :  { %2966 = sst [smem:[#allocation27_spill]] %s2939_s1 }
   0x2   :  { %2967 = sst [smem:[#allocation28_spill]] %s2940_s2 }
   0x3   :  { %2968 = sst [smem:[#allocation29_spill]] %s2941_s3 }
   0x4   :  { %2969 = sst [smem:[#allocation30_spill]] %s2942_s4 }
   0x5   :  { %2970 = sst [smem:[#allocation31_spill]] %s2943_s5 }
   0x6   :  { %2971 = sst [smem:[#allocation32_spill]] %s2944_s6 }
   0x7   :  { %2972 = sst [smem:[#allocation33_spill]] %s2945_s7 }
   0x8   :  { %2973 = sst [smem:[#allocation34_spill]] %s2946_s8 }
   0x9   :  { %2974 = sst [smem:[#allocation35_spill]] %s2947_s9 }
   0xa   :  { %2975 = sst [smem:[#allocation36_spill]] %s2948_s10 }
   0xb   :  { %2976 = sst [smem:[#allocation37_spill]] %s2949_s11 }
   0xc   :  { %2977 = sst [smem:[#allocation38_spill]] %s2950_s12 }
   0xd   :  { %2978 = sst [smem:[#allocation39_spill]] %s2951_s13 }
   0xe   :  { %2979 = sst [smem:[#allocation40_spill]] %s2952_s14 }
   0xf   :  { %19 = sst [smem:[#allocation5]] %s2938_s0 }
  0x10   :  { %20 = vsyncpa [#allocation7], 0 }
  0x11   :  { %22 = vsyncpa [#allocation7 + $0x1], 0 }
  0x12   :  { %23 = vsyncpa [#allocation10], 0 }
  0x13   :  { %24 = vsyncpa [#allocation13], 0 }
  0x14   :  { %25 = vsyncpa [#allocation16], 0 }
  0x15   :  { %26 = vsyncpa [#allocation8], 0 }
  0x16   :  { %28 = vsyncpa [#allocation8 + $0x1], 0  ;;  %s2405_s15 = smov 0   ;;  %s2407_s16 = smov 0  }
  0x17   :  { %s2409_s17 = smov 0   ;;  %s2411_s18 = smov 0  }
  0x18   :  { %s2413_s19 = smov 0   ;;  %s2415_s20 = smov 0  }
  0x19   :  { %s2417_s0 = smov 0   ;;  %s2419_s21 = smov 0  }
  0x1a   :  { %s2421_s22 = smov 0   ;;  %s2423_s23 = smov 0  }
  0x1b   :  { %s2425_s24 = smov 0  }
  0x1c LB: > { %2980 = sst [smem:[#allocation23_spill]] %s2284_s0  ;;  %s1610_s25 = sadd.s32 4294967295, %s2300_s24   ;;  %s2300_s24 = sphi %s2425_s24, %s34_s24   ;;  %s2296_s23 = sphi %s2423_s23, %s3034_s23   ;;  %s2292_s22 = sphi %s2421_s22, %s3033_s22   ;;  %s2288_s21 = sphi %s2419_s21, %s3032_s21   ;;  %s2284_s0 = sphi %s2417_s0, %s3031_s0   ;;  %s2280_s20 = sphi %s2415_s20, %s3030_s20   ;;  %s2276_s19 = sphi %s2413_s19, %s3029_s19   ;;  %s2272_s18 = sphi %s2411_s18, %s3028_s18   ;;  %s2268_s17 = sphi %s2409_s17, %s3027_s17   ;;  %s2264_s16 = sphi %s2407_s16, %s3026_s16   ;;  %s2260_s15 = sphi %s2405_s15, %s3025_s15  }
  0x1d   : > { %2981 = sst [smem:[#allocation24_spill]] %s2288_s21  ;;  %p1612_p0 = scmp.ge.s32.totalorder %s2300_s24, 1 }
  0x1e   : > { %p2462_p1 = scmp.eq.s32.totalorder %s1610_s25, 0  ;;  %p2466_p2 = scmp.eq.s32.totalorder %s1610_s25, 3 }
  0x1f   : > { %p369_p3 = scmp.lt.s32.totalorder %s2300_s24, 5  ;;  %s2302_s29 = smov [#allocation9]  }
  0x20   : > { %s2982_s26 = scalar_select %p2462_p1, 1, 0 }
  0x21   : > { %s2983_s27 = scalar_select %p2466_p2, 1, 0 }
  0x22   : > { %p2471_p4 = pnand %p1612_p0, %p369_p3  ;;  %s385_s30 = sshll.u32 %s2302_s29, 4  ;;  %s386_s30 = int_to_ptr.vmem [resolvable:$true] %s385_s30 }
  0x23   : > { %s2303_s14 = smov [#allocation12]   ;;  %s2304_s11 = smov [#allocation11]  }
  0x24   : > { %s2984_s28 = scalar_select %p2471_p4, 1, 0 }
  0x25   : > { %p1819_p5 = pneg %p2471_p4  ;;  %s409_s13 = sshll.u32 %s2303_s14, 4  ;;  %s2477_s13 = int_to_ptr.vmem [resolvable:$true] %s409_s13 }
  0x26   : > { %2985 = sst [smem:[#allocation25_spill]] %s2984_s28  ;;  %s395_s12 = sshll.u32 %s2304_s11, 4  ;;  %s2485_s12 = int_to_ptr.vmem [resolvable:$true] %s395_s12 }
  0x27   : > { %p2481_p6 = pnand %p1819_p5, %p2462_p1  ;;  %s2987_s5 = sld [smem:[#allocation31_spill]] }
  0x29   : > { %p2495_p8 = pneg %p2481_p6 }
  0x2d   : > { %s1996_s29 = scalar_lea.hbm %s2987_s5, 16 }
  0x2e   : > { %p1997_p7 = scmp.ne.s32.totalorder %s2987_s5, %s1996_s29  ;;  %p2003_p11 = scmp.lt.u32.totalorder %s1996_s29, %s2987_s5 }
  0x30   : > { %p1999_p9 = pnand %p2495_p8, %p1997_p7 }
  0x32   : > { %p2000_p10 = pneg %p1999_p9 }
  0x34   : > { %p2005_p12 = pnand %p2003_p11, %p2000_p10 }
  0x36   : > { %2008 = shalt.err (!%p2005_p12)
}
  0x37   : > { %s2009_s4 = scalar_lea.vmem %s386_s30, 16  ;;  %s2016_s1 = scalar_lea.vmem %s386_s30, 32 }
  0x38   : > { %p2010_p13 = scmp.ne.s32.totalorder %s386_s30, %s2009_s4  ;;  %p2017_p5 = scmp.lt.s32.totalorder %s386_s30, %s386_s30 }
  0x39   : > { %p2018_p4 = scmp.lt.s32.totalorder %s2016_s1, %s2009_s4 }
  0x3a   : > { %p2012_p0 = pnand %p2010_p13, %p2495_p8 }
  0x3b   : > { %p2019_p2 = por %p2018_p4, %p2017_p5 }
  0x3c   : > { %p2013_p3 = pneg %p2012_p0 }
  0x3e   : > { %p2020_p1 = pnand %p2019_p2, %p2013_p3 }
  0x40   : > { %2023 = shalt.err (!%p2020_p1)
}
  0x41   : > { %1822 = dma.hbm_to_vmem [thread:$0]  (!%p2481_p6), %s2987_s5, 16, %s386_s30, [#allocation10]  }
  0x42   : > { %s2989_s7 = sld [smem:[#allocation33_spill]] }
  0x48   : > { %s2024_s11 = scalar_lea.hbm %s2989_s7, 16 }
  0x49   : > { %p2025_p7 = scmp.ne.s32.totalorder %s2989_s7, %s2024_s11  ;;  %p2031_p1 = scmp.lt.u32.totalorder %s2024_s11, %s2989_s7 }
  0x4b   : > { %p2027_p9 = pnand %p2025_p7, %p2495_p8 }
  0x4d   : > { %p2028_p4 = pneg %p2027_p9 }
  0x4f   : > { %p2033_p2 = pnand %p2031_p1, %p2028_p4 }
  0x51   : > { %2036 = shalt.err (!%p2033_p2)
}
  0x52   : > { %s2037_s30 = scalar_lea.vmem %s2477_s13, 16  ;;  %s2044_s21 = scalar_lea.vmem %s2477_s13, 32 }
  0x53   : > { %p2038_p10 = scmp.ne.s32.totalorder %s2477_s13, %s2037_s30  ;;  %p2045_p13 = scmp.lt.s32.totalorder %s2477_s13, %s2477_s13 }
  0x54   : > { %p2046_p0 = scmp.lt.s32.totalorder %s2044_s21, %s2037_s30 }
  0x55   : > { %p2040_p11 = pnand %p2038_p10, %p2495_p8 }
  0x56   : > { %p2047_p3 = por %p2046_p0, %p2045_p13 }
  0x57   : > { %p2041_p12 = pneg %p2040_p11 }
  0x59   : > { %p2048_p5 = pnand %p2047_p3, %p2041_p12 }
  0x5b   : > { %2051 = shalt.err (!%p2048_p5)
}
  0x5c   : > { %1828 = dma.hbm_to_vmem [thread:$0]  (!%p2481_p6), %s2989_s7, 16, %s2477_s13, [#allocation13]  }
  0x5d   : > { %s2990_s6 = sld [smem:[#allocation32_spill]] }
  0x63   : > { %s2052_s29 = scalar_lea.hbm %s2990_s6, 256 }
  0x64   : > { %p2053_p7 = scmp.ne.s32.totalorder %s2990_s6, %s2052_s29  ;;  %p2059_p1 = scmp.lt.u32.totalorder %s2052_s29, %s2990_s6 }
  0x66   : > { %p2055_p9 = pnand %p2053_p7, %p2495_p8 }
  0x68   : > { %p2056_p4 = pneg %p2055_p9 }
  0x6a   : > { %p2061_p2 = pnand %p2059_p1, %p2056_p4 }
  0x6c   : > { %2064 = shalt.err (!%p2061_p2)
}
  0x6d   : > { %s2065_s13 = scalar_lea.vmem %s2485_s12, 256  ;;  %p2073_p13 = scmp.lt.s32.totalorder %s2485_s12, %s2485_s12 }
  0x6e   : > { %p2066_p10 = scmp.ne.s32.totalorder %s2485_s12, %s2065_s13  ;;  %p2074_p0 = scmp.lt.s32.totalorder %s2065_s13, %s2065_s13 }
  0x70   : > { %p2068_p11 = pnand %p2066_p10, %p2495_p8  ;;  %p2075_p3 = por %p2074_p0, %p2073_p13 }
  0x72   : > { %p2069_p12 = pneg %p2068_p11 }
  0x74   : > { %p2076_p5 = pnand %p2075_p3, %p2069_p12 }
  0x76   : > { %2079 = shalt.err (!%p2076_p5)
}
  0x77   : > { %s2305_s21 = smov 64   ;;  %s2306_s28 = smov 4  }
  0x78   : > { %1825 = dma.hbm_to_vmem [thread:$0]  (!%p2481_p6), %s2990_s6, 256, %s2485_s12, [#allocation10], %s2305_s21, %s2305_s21, %s2306_s28  }
  0x79   : > { %s2307_s0 = smov [#allocation14]   ;;  %s2308_s11 = smov [#allocation15]  }
  0x7a   : > { %s419_s29 = sshll.u32 %s2307_s0, 4  ;;  %s433_s4 = sshll.u32 %s2308_s11, 4  ;;  %s420_s29 = int_to_ptr.vmem [resolvable:$true] %s419_s29  ;;  %s2558_s4 = int_to_ptr.vmem [resolvable:$true] %s433_s4 }
  0x7b   : > { %s2991_s8 = sld [smem:[#allocation34_spill]] }
  0x81   : > { %s2080_s13 = scalar_lea.hbm %s2991_s8, 256 }
  0x82   : > { %p2081_p7 = scmp.ne.s32.totalorder %s2991_s8, %s2080_s13  ;;  %p2087_p1 = scmp.lt.u32.totalorder %s2080_s13, %s2991_s8 }
  0x84   : > { %p2083_p9 = pnand %p2081_p7, %p2495_p8 }
  0x86   : > { %p2084_p4 = pneg %p2083_p9 }
  0x88   : > { %p2089_p2 = pnand %p2087_p1, %p2084_p4 }
  0x8a   : > { %2092 = shalt.err (!%p2089_p2)
}
  0x8b   : > { %s2093_s10 = scalar_lea.vmem %s420_s29, 256  ;;  %p2101_p13 = scmp.lt.s32.totalorder %s420_s29, %s420_s29 }
  0x8c   : > { %p2094_p10 = scmp.ne.s32.totalorder %s420_s29, %s2093_s10  ;;  %p2102_p0 = scmp.lt.s32.totalorder %s2093_s10, %s2093_s10 }
  0x8e   : > { %p2096_p11 = pnand %p2094_p10, %p2495_p8  ;;  %p2103_p3 = por %p2102_p0, %p2101_p13 }
  0x90   : > { %p2097_p12 = pneg %p2096_p11 }
  0x92   : > { %p2104_p5 = pnand %p2103_p3, %p2097_p12 }
  0x94   : > { %2107 = shalt.err (!%p2104_p5)
}
  0x95   : > { %1831 = dma.hbm_to_vmem [thread:$0]  (!%p2481_p6), %s2991_s8, 256, %s420_s29, [#allocation13], %s2305_s21, %s2305_s21, %s2306_s28  }
  0x96   : > { %s2992_s9 = sld [smem:[#allocation35_spill]] }
  0x9c   : > { %s2108_s1 = scalar_lea.hbm %s2992_s9, 16 }
  0x9d   : > { %p2109_p7 = scmp.ne.s32.totalorder %s2992_s9, %s2108_s1  ;;  %p2115_p1 = scmp.lt.u32.totalorder %s2108_s1, %s2992_s9 }
  0x9f   : > { %p2111_p9 = pnand %p2109_p7, %p2495_p8 }
  0xa1   : > { %p2112_p4 = pneg %p2111_p9 }
  0xa3   : > { %p2117_p2 = pnand %p2115_p1, %p2112_p4 }
  0xa5   : > { %2120 = shalt.err (!%p2117_p2)
}
  0xa6   : > { %s2121_s21 = scalar_lea.vmem %s2558_s4, 16  ;;  %s2128_s28 = scalar_lea.vmem %s2558_s4, 32 }
  0xa7   : > { %p2122_p10 = scmp.ne.s32.totalorder %s2558_s4, %s2121_s21  ;;  %p2129_p13 = scmp.lt.s32.totalorder %s2558_s4, %s2558_s4 }
  0xa8   : > { %p2130_p0 = scmp.lt.s32.totalorder %s2128_s28, %s2121_s21 }
  0xa9   : > { %p2124_p11 = pnand %p2122_p10, %p2495_p8 }
  0xaa   : > { %p2131_p3 = por %p2130_p0, %p2129_p13 }
  0xab   : > { %p2125_p12 = pneg %p2124_p11 }
  0xad   : > { %p2132_p5 = pnand %p2131_p3, %p2125_p12 }
  0xaf   : > { %2135 = shalt.err (!%p2132_p5)
}
  0xb0   : > { %1834 = dma.hbm_to_vmem [thread:$0]  (!%p2481_p6), %s2992_s9, 16, %s2558_s4, [#allocation16]  }
  0xb1   : > { %s1611_s14 = sadd.s32 4294967294, %s2300_s24   ;;  %s43_s25 = sadd.s32 1, %s2292_s22 }
  0xb2   : > { %p44_p8 = scmp.ge.s32.totalorder %s43_s25, 2  ;;  %s46_s5 = sadd.s32 1, %s2296_s23 }
  0xb3   : > { %s81_s7 = sadd.s32 1, %s2280_s20  ;;  %p88_p7 = scmp.ne.s32.totalorder %s2280_s20, %s2276_s19 }
  0xb4   : > { %s3036_s25 = smov (%p44_p8, %s43_s25), 0  ;;  %s3038_s5 = smov (!%p44_p8, %s46_s5), %s2296_s23 }
  0xb5   : > { %p89_p9 = scmp.eq.s32.totalorder %s2300_s24, 0  ;;  %p94_p6 = scmp.ne.s32.totalorder %s2276_s19, %s2272_s18 }
  0xb6   : > { %p48_p4 = scmp.ge.s32.totalorder %s3038_s5, 2  ;;  %s341_s4 = ssub.s32 %s2292_s22, %s3036_s25 }
  0xb7   : > { %p2616_p1 = por %p89_p9, %p88_p7  ;;  %p2994_p2 = scmp.ne.s32.totalorder %s2982_s26, 0 }
  0xb8   : > { %s3040_s5 = smov (%p48_p4, %s3038_s5), 0  ;;  %s345_s1 = sadd.s32 1, %s2268_s17 }
  0xb9   : > { %p2622_p10 = por %p2994_p2, %p94_p6  ;;  %2996 = sst [smem:[#allocation26_spill]] %s3040_s5 }
  0xba   : > { %p355_p11 = scmp.ne.s32.totalorder %s2268_s17, %s2264_s16  ;;  %s78_s18 = ssub.s32 %s2296_s23, %s3040_s5 }
  0xbb   : > { %p361_p12 = scmp.ne.s32.totalorder %s2264_s16, %s2260_s15  ;;  %p79_p13 = scmp.eq.s32.totalorder %s78_s18, 0 }
  0xbc   : > { %s342_s30 = sor.u32 %s341_s4, %s78_s18  ;;  %p2997_p3 = scmp.ne.s32.totalorder %s2983_s27, 0 }
  0xbd   : > { %p343_p0 = scmp.eq.s32.totalorder %s342_s30, 0  ;;  %p362_p8 = scmp.eq.s32.totalorder %s1611_s14, 3 }
  0xbe   : > { %p2637_p5 = por %p2997_p3, %p355_p11  ;;  %p1848_p7 = scmp.lt.s32.totalorder %s2300_s24, 4 }
  0xbf   : > { %s2642_s3 = scalar_select %p79_p13, %s2280_s20, %s81_s7  }
  0xc0   : > { %s2998_s13 = scalar_select %p2637_p5, 1, 0 }
  0xc1   : > { %s2645_s12 = scalar_select %p343_p0, %s2268_s17, %s345_s1  }
  0xc2   : > { %s467_s21 = sand.u32 1, %s2280_s20   ;;  %s1669_s28 = sshll.u32 %s2296_s23, 8 }
  0xc3   : > { %p2650_p9 = por %p362_p8, %p361_p12  ;;  %s1619_s10 = sshll.u32 %s467_s21, 4 }
  0xc4   : > { %s3000_s2 = sld [smem:[#allocation28_spill]]  ;;  %p2661_p6 = pnand %p1848_p7, %p2616_p1 }
  0xc5   : > { %s2999_s29 = scalar_select %p2650_p9, 1, 0 }
  0xc6   : > { %s471_s7 = scalar_lea.vmem [#allocation6], %s1619_s10  ;;  %s2667_s30 = scalar_lea.sflag [#allocation7], %s467_s21 }
  0xc7   : > { %s478_s1 = sshll.u32 %s471_s7, 4  ;;  %p2138_p2 = pneg %p2661_p6  ;;  %s2665_s1 = int_to_ptr.vmem [resolvable:$true] %s478_s1 }
  0xca   : > { %s2657_s27 = scalar_lea.hbm %s3000_s2, %s1669_s28  ;;  %s2141_s18 = scalar_lea.hbm %s3000_s2, 512 }
  0xcb   : > { %s2136_s4 = scalar_lea.hbm %s2657_s27, 256  ;;  %p2142_p1 = scmp.lt.u32.totalorder %s2657_s27, %s3000_s2 }
  0xcc   : > { %p2137_p4 = scmp.ne.s32.totalorder %s2657_s27, %s2136_s4  ;;  %p2143_p13 = scmp.lt.u32.totalorder %s2141_s18, %s2136_s4 }
  0xcd   : > { %p2145_p3 = scmp.lt.u32.totalorder %s2136_s4, %s2657_s27 }
  0xce   : > { %p2139_p11 = pnand %p2138_p2, %p2137_p4  ;;  %p2144_p0 = por %p2143_p13, %p2142_p1 }
  0xd0   : > { %p2140_p12 = pneg %p2139_p11  ;;  %p2146_p8 = por %p2145_p3, %p2144_p0 }
  0xd2   : > { %p2147_p7 = pnand %p2146_p8, %p2140_p12 }
  0xd4   : > { %2150 = shalt.err (!%p2147_p7)
}
  0xd5   : > { %s2151_s21 = scalar_lea.vmem %s2665_s1, 256  ;;  %s2309_s10 = smov [#allocation6]  }
  0xd6   : > { %p2152_p4 = scmp.ne.s32.totalorder %s2665_s1, %s2151_s21  ;;  %s2156_s7 = sshll.u32 %s2309_s10, 4  ;;  %s2157_s7 = int_to_ptr.vmem [resolvable:$false] %s2156_s7 }
  0xd7   : > { %s2158_s6 = scalar_lea.vmem %s2157_s7, 512  ;;  %p2159_p5 = scmp.lt.s32.totalorder %s2665_s1, %s2157_s7 }
  0xd8   : > { %p2154_p11 = pnand %p2152_p4, %p2138_p2  ;;  %p2160_p1 = scmp.lt.s32.totalorder %s2158_s6, %s2151_s21 }
  0xda   : > { %p2155_p9 = pneg %p2154_p11  ;;  %p2161_p13 = por %p2160_p1, %p2159_p5 }
  0xdc   : > { %p2162_p0 = pnand %p2161_p13, %p2155_p9 }
  0xde   : > { %2165 = shalt.err (!%p2162_p0)
}
  0xdf   : > { %s2310_s8 = smov 128   ;;  %s2311_s4 = smov 8  }
  0xe0   : > { %1838 = dma.hbm_to_vmem [thread:$0]  (!%p2661_p6), %s2657_s27, 256, %s2665_s1, %s2667_s30, %s2310_s8, %s2310_s8, %s2311_s4  }
  0xe1   : > { %s3002_s0 = sld [smem:[#allocation25_spill]] }
  0xe7   : > { %p3003_p2 = scmp.ne.s32.totalorder %s3002_s0, 0 }
  0xe8   : > { %s498_s28 = sand.u32 (!%p3003_p2), 1, %s2276_s19  }
  0xe9   : > { %496 = sbr.rel (%p3003_p2) target bundleno = 2414 (0x96e), region = 72  ;;  %s2698_s18 = sshll.u32 (!%p3003_p2), %s498_s28, 4 }
  0xea   : > { %s499_s21 = scalar_lea.sflag (!%p3003_p2), [#allocation7], %s498_s28 }
  0xf0   : > { %2239 = dma.done.wait (%p2622_p10), %s499_s21, 256  }
  0xf1   : > { %2241 = vsyncadd (%p2622_p10), %s499_s21, 4294967040  ;;  %p3004_p5 = scmp.ne.s32.totalorder %s2982_s26, 0 }
  0xf3   : > { %2243 = dma.done.wait (%p3004_p5), [#allocation10], 272  }
  0xf4   : > { %2245 = vsyncadd (%p3004_p5), [#allocation10], 4294967024 }
  0xf5   : > { %2247 = dma.done.wait (%p3004_p5), [#allocation13], 272  }
  0xf6   : > { %2249 = vsyncadd (%p3004_p5), [#allocation13], 4294967024 }
  0xf7   : > { %2251 = dma.done.wait (%p3004_p5), [#allocation16], 16  }
  0xf8   : > { %2253 = vsyncadd (%p3004_p5), [#allocation16], 4294967280  ;;  %s3005_s11 = sld [smem:[#allocation24_spill]]  ;;  %s3006_s27 = sld [smem:[#allocation23_spill]] }
  0xf9   : > { %s2965_s14 = sand.u32 1, %s2264_s16   ;;  %s2719_s1 = sld [smem:[#allocation5]] }
  0xfa   : > { %s2723_s30 = sshll.u32 %s2965_s14, 3  ;;  %s3007_s4 = sld [smem:[#allocation29_spill]] }
  0xfb   : > { %s3008_s9 = sld [smem:[#allocation27_spill]]  ;;  %s575_s14 = scalar_lea.vmem [#allocation17], %s2723_s30 }
  0xfe   : > { %p576_p10 = scmp.lt.s32.totalorder %s3005_s11, 1  ;;  %p578_p9 = scmp.lt.s32.totalorder %s3006_s27, 1 }
  0xff   : > { %p1632_p6 = scmp.ne.s32.totalorder %s3006_s27, 0 }
 0x100   : > { %s3042_s11 = smov (!%p576_p10, %s3005_s11), 1  ;;  %v1966_v0 = vld [vmem:[#allocation11] sm:$0xff] (!%p1632_p6)   ;;  %v2312_v1 = vmov (!%p1632_p6), 0.0   ;;  %v1967_v2 = vld [vmem:[#allocation11 + $0x8] sm:$0xff] (!%p1632_p6)   ;;  %vm2313_vm0 = vmmov (!%p1632_p6), 0   ;;  %vm619_vm1 = vcmask (!%p1632_p6), 261120  }
 0x101   : > { %s579_s26 = scalar_select %p578_p9, %s3006_s27, 1 }
 0x102   : > { %s1630_s7 = sshll.u32 %s3042_s11, 1  ;;  %s586_s0 = scalar_lea.vmem %s3007_s4, %s3042_s11  ;;  %1703 = vmatprep.subr.bf16.mxu0 (!%p1632_p6), %v2312_v1  ;;  %1707 = vmatprep.mubr.msk.bf16.mxu0 (!%p1632_p6), %vm2313_vm0, %v2312_v1  ;;  %v1633_v6 = vld [vmem:[#allocation12] ss:$0 sm:$0xff] (!%p1632_p6)  ;;  %vm665_vm2 = vcmask (!%p1632_p6), 523264  }
 0x103   : > { %s581_s28 = sadd.s32 %s1630_s7, %s579_s26  ;;  %592 = sbr.rel (%p1632_p6) target bundleno = 485 (0x1e5), region = 100  ;;  %1704 = vmatpush3.bf16.msra.mxu0 (!%p1632_p6), %v1966_v0 }
 0x104   : > { %s1631_s21 = sshll.u32 %s581_s28, 3  ;;  %s3009_s26 = scalar_lea.vmem (!%p1632_p6), [#allocation6], %s2698_s18  ;;  %1705 = vmatprep.subr.bf16.mxu0 (!%p1632_p6), %v2312_v1 }
 0x105   : > { %s2738_s5 = scalar_lea.vmem %s3008_s9, %s1631_s21  ;;  %v593_v3 = vld [vmem:[%s3009_s26] sm:$0xff] (!%p1632_p6)  ;;  %s3010_s7 = smov (!%p1632_p6), %s3009_s26 }
 0x106   : > { %v594_v4 = vld [vmem:[%s3010_s7 + $0x8] sm:$0xff] (!%p1632_p6) }
 0x107   : > { %v595_v5 = vpack.c.bf16 (!%p1632_p6), %v594_v4, %v593_v3  ;;  %1706 = vmatpush3.bf16.msra.mxu0 (!%p1632_p6), %v1967_v2 }
 0x10a   : > { %1708 = vmatmul.mubr.msk.bf16.vlgmr.msra.gmra.mrb[0].mxu0 %vm619_vm1, %v595_v5 }
 0x1dd   : > { %v657_v7 = vpop.f32.mrb[0].mxu0 }
 0x1de   : > { %v1709_v8 = vpop.f32.mrb[1].mxu0  ;;  %v658_v10 = vadd.f32 %v1633_v6, %v657_v7 }
 0x1df   : > { %v660_v9 = vpop.f32.mrb[2].mxu0 }
 0x1e0   : > { %v661_v11 = vadd.f32 %v1633_v6, %v660_v9  ;;  %v1710_v12 = vpop.f32.mrb[3].mxu0 }
 0x1e2   : > { %v664_v13 = vpack.c.bf16 %v661_v11, %v658_v10 }
 0x1e4   : > { %666 = vst.msk [vmem:[#allocation2] sm:$0xff] %vm665_vm2, %v664_v13 }
 0x1e5 PF: > { %s3011_s18 = sld [smem:[#allocation30_spill]]  ;;  %v2314_v15 = vmov 0.0   ;;  %vm2315_vm3 = vmmov 0   ;;  %v2757_v17 = vld [vmem:[%s2738_s5] sm:$0xff]  ;;  %vm745_vm4 = vcmask 64512   ;;  %vm692_vm5 = vcmask 261120  }
 0x1e6   : > { %1711 = vmatprep.subr.bf16.mxu0 %v2314_v15  ;;  %1719 = vmatprep.subr.bf16.mxu1 %v2314_v15  ;;  %s2316_s8 = smov 120   ;;  %v668_v20 = vpack.c.bf16 %v2757_v17, %v2757_v17  ;;  %s2317_s5 = smov 112   ;;  %v1637_v21 = vld [vmem:[#allocation9] ss:$0 sm:$0xff]  ;;  %v1641_v37 = vld [vmem:[%s586_s0] ss:$0 sm:$0xff] }
 0x1e7   : > { %1715 = vmatprep.mubr.msk.bf16.mxu0 %vm2315_vm3, %v2314_v15  ;;  %1721 = vmatprep.mubr.msk.bf16.mxu1 %vm2315_vm3, %v2314_v15  ;;  %s2318_s4 = smov 104   ;;  %vm792_vm6 = vcmask 130048   ;;  %s2319_s11 = smov 96   ;;  %vm968_vm7 = vcmask 130112   ;;  %vm1084_vm8 = vcmask 195712   ;;  %vm1200_vm9 = vcmask 261312  }
 0x1e8   : > { %s2320_s0 = smov 80   ;;  %s2321_s7 = smov 72   ;;  %vm1389_vm10 = vcmask 523264  }
 0x1e9   : > { %s2322_s2 = smov 88   ;;  %s2323_s9 = smov 8  }
 0x1ea   : > { %s2325_s27 = smov 24   ;;  %s3018_s28 = sld [smem:[#allocation23_spill]] }
 0x1eb   : > { %s3012_s10 = smov %s3011_s18  ;;  %v1968_v14 = vld [vmem:[%s3011_s18] sm:$0xff]   ;;  %s2324_s18 = smov 16  }
 0x1ec   : > { %1712 = vmatpush3.bf16.msra.mxu0 %v1968_v14  ;;  %v1969_v16 = vld [vmem:[%s3012_s10 + $0x8] sm:$0xff]   ;;  %v2759_v18 = vld [vmem:[#allocation2] sm:$0xff]  ;;  %s3020_s6 = sld [smem:[#allocation40_spill]]  ;;  %p3022_p3 = scmp.ne.s32.totalorder %s2998_s13, 0 }
 0x1ed   : > { %1713 = vmatprep.subr.bf16.mxu0 %v2314_v15  ;;  %858 = vrot.lane.b32.xlu0 %v2759_v18, %s2316_s8  ;;  %v750_v19 = vsel %vm745_vm4, %v2759_v18, 0  ;;  %s2326_s26 = smov [#allocation17]  }
 0x1ee   : > { %1720 = vmatpush3.bf16.xpose.msra.mxu1 %v750_v19  ;;  %974 = vrot.lane.b32.xlu1 %v2759_v18, %s2317_s5 }
 0x1ef   : > { %1731 = vmatprep.subr.bf16.mxu1 %v2314_v15 }
 0x1f0   : > { %1714 = vmatpush3.bf16.msra.mxu0 %v1969_v16 }
 0x1f1   : > { %1725 = vmatprep.subr.bf16.mxu0 %v2314_v15 }
 0x1f3   : > { %1716 = vmatmul.mubr.msk.bf16.vlgmr.msra.gmra.mrb[0].mxu0 %vm692_vm5, %v668_v20 }
 0x1f4   : > { %1727 = vmatprep.mubr.msk.bf16.mxu0 %vm2315_vm3, %v2314_v15 }
 0x25f   : > { %v859_v25 = vpop.permute.xlu0 %858 }
 0x260   : > { %v864_v29 = vsel %vm745_vm4, %v859_v25, 0  ;;  %v975_v30 = vpop.permute.xlu1 %974 }
 0x261   : > { %v980_v31 = vsel %vm745_vm4, %v975_v30, 0 }
 0x2c6   : > { %v730_v22 = vpop.f32.mrb[0].mxu0 }
 0x2c7   : > { %v731_v23 = vadd.f32 %v1637_v21, %v730_v22  ;;  %v1717_v24 = vpop.f32.mrb[1].mxu0 }
 0x2c8   : > { %v733_v26 = vpop.f32.mrb[2].mxu0 }
 0x2c9   : > { %v736_v27 = vpack.c.bf16 %v731_v23, %v731_v23  ;;  %v1718_v28 = vpop.f32.mrb[3].mxu0 }
 0x2cb   : > { %971 = vrot.lane.b32.xlu1 %v736_v27, %s2317_s5  ;;  %855 = vrot.lane.b32.xlu0 %v736_v27, %s2316_s8  ;;  %s3014_s5 = sld [smem:[#allocation36_spill]]  ;;  %s3016_s8 = sld [smem:[#allocation37_spill]] }
 0x2cc   : > { %1722 = vmatmul.mubr.msk.bf16.vlgmr.msra.gmra.mrb[0].mxu1 %vm745_vm4, %v736_v27 }
 0x2cd   : > { %1732 = vmatpush3.bf16.xpose.msra.mxu1 %v864_v29  ;;  %1733 = vmatprep.mubr.msk.bf16.mxu1 %vm2315_vm3, %v2314_v15 }
 0x2ce   : > { %1743 = vmatprep.subr.bf16.mxu1 %v2314_v15 }
 0x2cf   : > { %1087 = vrot.lane.b32.xlu1 %v736_v27, %s2318_s4  ;;  %1090 = vrot.lane.b32.xlu0 %v2759_v18, %s2318_s4  ;;  %s3017_s4 = sld [smem:[#allocation24_spill]] }
 0x2d5   : > { %s1665_s21 = sshll.u32 %s3017_s4, 1  ;;  %s3021_s4 = sand.u32 1, %s2264_s16  }
 0x33d   : > { %v856_v32 = vpop.permute.xlu0 %855  ;;  %v972_v35 = vpop.permute.xlu1 %971 }
 0x33e   : > { %1734 = vmatmul.mubr.msk.bf16.vlgmr.msra.gmra.mrb[4].mxu1 %vm745_vm4, %v856_v32 }
 0x33f   : > { %1744 = vmatpush3.bf16.xpose.msra.mxu1 %v980_v31  ;;  %1745 = vmatprep.mubr.msk.bf16.mxu1 %vm2315_vm3, %v2314_v15 }
 0x340   : > { %1755 = vmatprep.subr.bf16.mxu1 %v2314_v15 }
 0x341   : > { %v1091_v33 = vpop.permute.xlu0 %1090  ;;  %v1088_v36 = vpop.permute.xlu1 %1087 }
 0x342   : > { %v1096_v34 = vsel %vm745_vm4, %v1091_v33, 0 }
 0x346   : > { %1746 = vmatmul.mubr.msk.bf16.vlgmr.msra.gmra.mrb[8].mxu1 %vm745_vm4, %v972_v35 }
 0x347   : > { %1756 = vmatpush3.bf16.xpose.msra.mxu1 %v1096_v34  ;;  %1757 = vmatprep.mubr.msk.bf16.mxu1 %vm2315_vm3, %v2314_v15 }
 0x348   : > { %1767 = vmatprep.subr.bf16.mxu1 %v2314_v15 }
 0x34e   : > { %1758 = vmatmul.mubr.msk.bf16.vlgmr.msra.gmra.mrb[12].mxu1 %vm745_vm4, %v1088_v36 }
 0x34f   : > { %1771 = vmatprep.mubr.msk.bf16.mxu1 %vm2315_vm3, %v2314_v15 }
 0x39f   : > { %v786_v38 = vpop.f32.mrb[0].mxu1 }
 0x3a0   : > { %v787_v39 = vadd.f32 %v1641_v37, %v786_v38  ;;  %v1723_v40 = vpop.f32.mrb[1].mxu1 }
 0x3a1   : > { %v789_v41 = vpop.f32.mrb[2].mxu1 }
 0x3a2   : > { %v1724_v42 = vpop.f32.mrb[3].mxu1  ;;  %v793_v43 = vsel %vm792_vm6, %v787_v39, -inf }
 0x3a3   : > { %794 = vmax.xlane.f32.xlu0 %v793_v43 }
 0x411   : > { %v900_v44 = vpop.f32.mrb[4].mxu1 }
 0x412   : > { %v901_v45 = vadd.f32 %v1641_v37, %v900_v44  ;;  %v1735_v46 = vpop.f32.mrb[5].mxu1 }
 0x413   : > { %v903_v47 = vpop.f32.mrb[6].mxu1 }
 0x414   : > { %v1736_v48 = vpop.f32.mrb[7].mxu1  ;;  %v906_v49 = vsel %vm792_vm6, %v901_v45, -inf }
 0x415   : > { %907 = vmax.xlane.f32.xlu1 %v906_v49  ;;  %v1970_v48 = vld [vmem:[#allocation14] sm:$0xff]   ;;  %v1971_v49 = vld [vmem:[#allocation14 + $0x8] sm:$0xff]  }
 0x416   : > { %1768 = vmatpush3.bf16.msra.mxu1 %v1970_v48 }
 0x417   : > { %1769 = vmatprep.subr.bf16.mxu1 %v2314_v15 }
 0x419   : > { %v1016_v50 = vpop.f32.mrb[8].mxu1 }
 0x41a   : > { %v1017_v51 = vadd.f32 %v1641_v37, %v1016_v50  ;;  %v1747_v52 = vpop.f32.mrb[9].mxu1  ;;  %1770 = vmatpush3.bf16.msra.mxu1 %v1971_v49 }
 0x41b   : > { %v1019_v53 = vpop.f32.mrb[10].mxu1  ;;  %1783 = vmatprep.subr.bf16.mxu1 %v2314_v15 }
 0x41c   : > { %v1748_v54 = vpop.f32.mrb[11].mxu1  ;;  %v1022_v55 = vsel %vm792_vm6, %v1017_v51, -inf }
 0x41d   : > { %1023 = vmax.xlane.f32.xlu0 %v1022_v55 }
 0x421   : > { %v1132_v56 = vpop.f32.mrb[12].mxu1 }
 0x422   : > { %v1133_v57 = vadd.f32 %v1641_v37, %v1132_v56  ;;  %v1759_v58 = vpop.f32.mrb[13].mxu1 }
 0x423   : > { %v1135_v59 = vpop.f32.mrb[14].mxu1 }
 0x424   : > { %v1760_v60 = vpop.f32.mrb[15].mxu1  ;;  %v1138_v61 = vsel %vm792_vm6, %v1133_v57, -inf }
 0x425   : > { %1139 = vmax.xlane.f32.xlu0 %v1138_v61 }
 0x430   : > { %v795_v62 = vpop.xlane.xlu0 %794 }
 0x431   : > { %v796_v63 = vsub.f32 %v787_v39, %v795_v62 }
 0x433   : > { %v797_v0 = vmul.f32 1.442695, %v796_v63  ;;  %v1972_v63 = vld [vmem:[%s3014_s5] sm:$0xff]  }
 0x435   : > { %1978 = vpow2.f32 %v797_v0  ;;  %v1973_v0 = vld [vmem:[%s3014_s5 + $0x8] sm:$0xff]  }
 0x43f   : > { %v1979_v1 = vpop.eup %1978 }
 0x440   : > { %v799_v2 = vsel %vm792_vm6, %v1979_v1, 0.0 }
 0x441   : > { %800 = vadd.xlane.f32.xlu1 %v799_v2 }
 0x452   : > { %806 = vrot.lane.b32.xlu1 %v2759_v18, %s2319_s11  ;;  %s3015_s11 = sld [smem:[#allocation38_spill]] }
 0x4a2   : > { %v908_v3 = vpop.xlane.xlu1 %907 }
 0x4a3   : > { %v909_v4 = vsub.f32 %v901_v45, %v908_v3  ;;  %v1270_v3 = vstv %s2719_s1  ;;  %s1448_s1 = sadd.s32 %s3018_s28, %s1665_s21  ;;  %s1437_s28 = scalar_lea.sflag [#allocation8], %s3021_s4 }
 0x4a5   : > { %v910_v5 = vmul.f32 1.442695, %v909_v4 }
 0x4a7   : > { %1980 = vpow2.f32 %v910_v5 }
 0x4aa   : > { %v1024_v6 = vpop.xlane.xlu0 %1023 }
 0x4ab   : > { %v1025_v7 = vsub.f32 %v1017_v51, %v1024_v6 }
 0x4ad   : > { %v1026_v8 = vmul.f32 1.442695, %v1025_v7 }
 0x4af   : > { %1982 = vpow2.f32 %v1026_v8 }
 0x4b1   : > { %v1981_v9 = vpop.eup %1980 }
 0x4b2   : > { %v1140_v10 = vpop.xlane.xlu0 %1139  ;;  %v912_v11 = vsel %vm792_vm6, %v1981_v9, 0.0 }
 0x4b3   : > { %v1141_v12 = vsub.f32 %v1133_v57, %v1140_v10  ;;  %913 = vadd.xlane.f32.xlu0 %v912_v11  ;;  %v1974_v11 = vld [vmem:[%s3015_s11] sm:$0xff]  }
 0x4b5   : > { %v1142_v13 = vmul.f32 1.442695, %v1141_v12  ;;  %v1975_v12 = vld [vmem:[%s3015_s11 + $0x8] sm:$0xff]  }
 0x4b7   : > { %1984 = vpow2.f32 %v1142_v13  ;;  %v1976_v13 = vld [vmem:[%s3015_s11 + $0x10] sm:$0xff]  }
 0x4b9   : > { %v1983_v14 = vpop.eup %1982 }
 0x4ba   : > { %v1028_v16 = vsel %vm792_vm6, %v1983_v14, 0.0 }
 0x4bb   : > { %1029 = vadd.xlane.f32.xlu1 %v1028_v16 }
 0x4c1   : > { %v1985_v19 = vpop.eup %1984 }
 0x4c2   : > { %v1144_v20 = vsel %vm792_vm6, %v1985_v19, 0.0 }
 0x4c3   : > { %1145 = vadd.xlane.f32.xlu0 %v1144_v20 }
 0x4cc   : > { %1034 = vrot.lane.b32.xlu1 %v2759_v18, %s2320_s0  ;;  %s2170_s0 = sshll.u32 %s2326_s26, 4  ;;  %s2171_s0 = int_to_ptr.vmem [resolvable:$false] %s2170_s0 }
 0x4ce   : > { %v801_v21 = vpop.xlane.xlu1 %800 }
 0x4cf   : > { %1986 = vrcp.f32 %v801_v21 }
 0x4d0   : > { %1150 = vrot.lane.b32.xlu1 %v2759_v18, %s2321_s7  ;;  %s3019_s7 = sld [smem:[#allocation39_spill]] }
 0x4d2   : > { %v807_v22 = vpop.permute.xlu1 %806 }
 0x4d3   : > { %1726 = vmatpush3.bf16.msra.mxu0 %v807_v22 }
 0x4d4   : > { %1737 = vmatprep.subr.bf16.mxu0 %v2314_v15 }
 0x4d9   : > { %v1987_v23 = vpop.eup %1986  ;;  %918 = vrot.lane.b32.xlu0 %v2759_v18, %s2322_s2  ;;  %s1666_s2 = sshll.u32 %s1448_s1, 7 }
 0x4da   : > { %v803_v24 = vmul.f32 %v1987_v23, %v1979_v1  ;;  %v1650_v1 = vld [vmem:[#allocation15] ss:$0 sm:$0xff] }
 0x4dc   : > { %v804_v25 = vpack.c.bf16 %v803_v24, %v803_v24 }
 0x4de   : > { %1728 = vmatmul.mubr.msk.bf16.vlgmr.msra.gmra.mrb[4].mxu0 %vm792_vm6, %v804_v25 }
 0x4df   : > { %1739 = vmatprep.mubr.msk.bf16.mxu0 %vm2315_vm3, %v2314_v15 }
 0x540   : > { %v914_v26 = vpop.xlane.xlu0 %913 }
 0x541   : > { %1988 = vrcp.f32 %v914_v26 }
 0x548   : > { %v1030_v27 = vpop.xlane.xlu1 %1029 }
 0x549   : > { %1990 = vrcp.f32 %v1030_v27 }
 0x54b   : > { %v1989_v28 = vpop.eup %1988 }
 0x54c   : > { %v916_v30 = vmul.f32 %v1989_v28, %v1981_v9  ;;  %v1035_v33 = vpop.permute.xlu1 %1034 }
 0x54e   : > { %v917_v32 = vpack.c.bf16 %v916_v30, %v916_v30 }
 0x550   : > { %v1146_v29 = vpop.xlane.xlu0 %1145  ;;  %v1151_v36 = vpop.permute.xlu1 %1150 }
 0x551   : > { %1992 = vrcp.f32 %v1146_v29 }
 0x553   : > { %v1991_v18 = vpop.eup %1990 }
 0x554   : > { %v919_v31 = vpop.permute.xlu0 %918  ;;  %v1032_v34 = vmul.f32 %v1991_v18, %v1983_v14  ;;  %v1654_v14 = vld [vmem:[%s3016_s8] ss:$0 sm:$0xff]  ;;  %s2871_s8 = scalar_lea.hbm %s3020_s6, %s1666_s2 }
 0x555   : > { %1738 = vmatpush3.bf16.msra.mxu0 %v919_v31 }
 0x556   : > { %1749 = vmatprep.subr.bf16.mxu0 %v2314_v15  ;;  %v1033_v35 = vpack.c.bf16 %v1032_v34, %v1032_v34 }
 0x558   : > { %1740 = vmatmul.mubr.msk.bf16.vlgmr.msra.gmra.mrb[8].mxu0 %vm792_vm6, %v917_v32  ;;  %v1658_v32 = vld [vmem:[%s3019_s7] ss:$0 sm:$0xff]  ;;  %s2172_s7 = scalar_lea.vmem %s2171_s0, 256 }
 0x559   : > { %1750 = vmatpush3.bf16.msra.mxu0 %v1035_v33  ;;  %1751 = vmatprep.mubr.msk.bf16.mxu0 %vm2315_vm3, %v2314_v15 }
 0x55a   : > { %1761 = vmatprep.subr.bf16.mxu0 %v2314_v15 }
 0x55b   : > { %v1993_v37 = vpop.eup %1992 }
 0x55c   : > { %v1148_v38 = vmul.f32 %v1993_v37, %v1985_v19 }
 0x55e   : > { %v1149_v39 = vpack.c.bf16 %v1148_v38, %v1148_v38 }
 0x560   : > { %1752 = vmatmul.mubr.msk.bf16.vlgmr.msra.gmra.mrb[12].mxu0 %vm792_vm6, %v1033_v35 }
 0x561   : > { %1762 = vmatpush3.bf16.msra.mxu0 %v1151_v36  ;;  %1763 = vmatprep.mubr.msk.bf16.mxu0 %vm2315_vm3, %v2314_v15 }
 0x562   : > { %1775 = vmatprep.subr.bf16.mxu0 %v2314_v15 }
 0x568   : > { %1764 = vmatmul.mubr.msk.bf16.vlgmr.msra.gmra.mrb[16].mxu0 %vm792_vm6, %v1149_v39 }
 0x569   : > { %1779 = vmatprep.mubr.msk.bf16.mxu0 %vm2315_vm3, %v2314_v15  ;;  %1776 = vmatpush3.bf16.msra.mxu0 %v1972_v63 }
 0x56a   : > { %1777 = vmatprep.subr.bf16.mxu0 %v2314_v15 }
 0x56d   : > { %1778 = vmatpush3.bf16.msra.mxu0 %v1973_v0 }
 0x5b1   : > { %v846_v40 = vpop.f32.mrb[4].mxu0 }
 0x5b2   : > { %852 = vst.msk [vmem:[#allocation3] sm:$0xff] %vm745_vm4, %v846_v40  ;;  %v1729_v41 = vpop.f32.mrb[5].mxu0 }
 0x5b3   : > { %v849_v42 = vpop.f32.mrb[6].mxu0 }
 0x5b4   : > { %v1730_v43 = vpop.f32.mrb[7].mxu0 }
 0x62b   : > { %v958_v44 = vpop.f32.mrb[8].mxu0 }
 0x62c   : > { %965 = vrot.lane.b32.xlu0 %v958_v44, %s2323_s9  ;;  %v1741_v45 = vpop.f32.mrb[9].mxu0  ;;  %s1452_s9 = sshll.u32 %s575_s14, 4  ;;  %s2873_s9 = int_to_ptr.vmem [resolvable:$true] %s1452_s9 }
 0x62d   : > { %v961_v46 = vpop.f32.mrb[10].mxu0  ;;  %s2166_s21 = scalar_lea.vmem %s2873_s9, 128  ;;  %p2173_p4 = scmp.lt.s32.totalorder %s2873_s9, %s2171_s0 }
 0x62e   : > { %v1742_v47 = vpop.f32.mrb[11].mxu0  ;;  %p2167_p12 = scmp.ne.s32.totalorder %s2873_s9, %s2166_s21  ;;  %p2174_p11 = scmp.lt.s32.totalorder %s2172_s7, %s2166_s21 }
 0x630   : > { %p2168_p8 = pnand %p2167_p12, %p3022_p3  ;;  %p2175_p1 = por %p2174_p11, %p2173_p4 }
 0x632   : > { %p2169_p7 = pneg %p2168_p8 }
 0x633   : > { %v1074_v50 = vpop.f32.mrb[12].mxu0 }
 0x634   : > { %1081 = vrot.lane.b32.xlu1 %v1074_v50, %s2324_s18  ;;  %v1753_v51 = vpop.f32.mrb[13].mxu0  ;;  %p2176_p13 = pnand %p2175_p1, %p2169_p7 }
 0x635   : > { %v1077_v52 = vpop.f32.mrb[14].mxu0 }
 0x636   : > { %v1754_v53 = vpop.f32.mrb[15].mxu0 }
 0x63b   : > { %v1190_v54 = vpop.f32.mrb[16].mxu0 }
 0x63c   : > { %1197 = vrot.lane.b32.xlu0 %v1190_v54, %s2325_s27  ;;  %v1765_v55 = vpop.f32.mrb[17].mxu0 }
 0x63d   : > { %v1193_v56 = vpop.f32.mrb[18].mxu0 }
 0x63e   : > { %v1766_v57 = vpop.f32.mrb[19].mxu0 }
 0x69e   : > { %v966_v58 = vpop.permute.xlu0 %965 }
 0x69f   : > { %969 = vst.msk [vmem:[#allocation3] sm:$0xff] %vm968_vm7, %v966_v58 }
 0x6a6   : > { %v1082_v59 = vpop.permute.xlu1 %1081 }
 0x6a7   : > { %1085 = vst.msk [vmem:[#allocation3] sm:$0xff] %vm1084_vm8, %v1082_v59 }
 0x6ae   : > { %v1198_v60 = vpop.permute.xlu0 %1197 }
 0x6af   : > { %1201 = vst.msk [vmem:[#allocation3] sm:$0xff] %vm1200_vm9, %v1198_v60 }
 0x6b6   : > { %v1202_v61 = vld [vmem:[#allocation3] sm:$0xff] }
 0x6b7   : > { %v1203_v62 = vpack.c.bf16 %v1202_v61, %v1202_v61 }
 0x6b9   : > { %1772 = vmatmul.mubr.msk.bf16.vlgmr.msra.gmra.mrb[16].mxu1 %vm692_vm5, %v1203_v62 }
 0x6ba   : > { %1791 = vmatprep.mubr.msk.bf16.mxu1 %vm2315_vm3, %v2314_v15  ;;  %1784 = vmatpush3.bf16.msra.mxu1 %v1974_v11 }
 0x6bb   : > { %1785 = vmatprep.subr.bf16.mxu1 %v2314_v15 }
 0x6be   : > { %1786 = vmatpush3.bf16.msra.mxu1 %v1975_v12 }
 0x6bf   : > { %1787 = vmatprep.subr.bf16.mxu1 %v2314_v15 }
 0x6c2   : > { %1788 = vmatpush3.bf16.msra.mxu1 %v1976_v13 }
 0x6c3   : > { %1789 = vmatprep.subr.bf16.mxu1 %v2314_v15 }
 0x78c   : > { %v1264_v2 = vpop.f32.mrb[16].mxu1 }
 0x78d   : > { %v1265_v4 = vadd.f32 %v1650_v1, %v1264_v2  ;;  %v1773_v5 = vpop.f32.mrb[17].mxu1 }
 0x78e   : > { %v1267_v6 = vpop.f32.mrb[18].mxu1 }
 0x78f   : > { %v1271_v7 = vmul.f32 %v1270_v3, %v1265_v4  ;;  %v1774_v8 = vpop.f32.mrb[19].mxu1 }
 0x791   : > { %v1272_v9 = vadd.f32 %v1271_v7, %v2757_v17  ;;  %v1977_v17 = vld [vmem:[%s3015_s11 + $0x18] sm:$0xff]  }
 0x792   : > { %1790 = vmatpush3.bf16.msra.mxu1 %v1977_v17 }
 0x793   : > { %v1273_v10 = vpack.c.bf16 %v1272_v9, %v1272_v9 }
 0x795   : > { %1780 = vmatmul.mubr.msk.bf16.vlgmr.msra.gmra.mrb[20].mxu0 %vm692_vm5, %v1273_v10 }
 0x868   : > { %v1334_v16 = vpop.f32.mrb[20].mxu0 }
 0x869   : > { %v1335_v19 = vadd.f32 %v1654_v14, %v1334_v16  ;;  %v1781_v20 = vpop.f32.mrb[21].mxu0 }
 0x86a   : > { %v1337_v21 = vpop.f32.mrb[22].mxu0 }
 0x86b   : > { %v1341_v22 = vmul.f32 0.044715, %v1335_v19  ;;  %v1782_v23 = vpop.f32.mrb[23].mxu0  ;;  %v1340_v28 = vmul.f32 0.5, %v1335_v19 }
 0x86d   : > { %v1342_v24 = vmul.f32 %v1341_v22, %v1335_v19 }
 0x86f   : > { %v1343_v25 = vmul.f32 %v1342_v24, %v1335_v19 }
 0x871   : > { %v1344_v26 = vadd.f32 %v1343_v25, %v1335_v19 }
 0x873   : > { %v1345_v27 = vmul.f32 0.7978846, %v1344_v26 }
 0x875   : > { %1994 = vtanh.f32 %v1345_v27 }
 0x87f   : > { %v1995_v15 = vpop.eup %1994 }
 0x880   : > { %v1347_v29 = vadd.f32 1.0, %v1995_v15 }
 0x882   : > { %v1348_v30 = vmul.f32 %v1347_v29, %v1340_v28 }
 0x884   : > { %v1349_v31 = vpack.c.bf16 %v1348_v30, %v1348_v30 }
 0x886   : > { %1792 = vmatmul.mubr.msk.bf16.vlgmr.msra.gmra.mrb[20].mxu1 %vm1389_vm10, %v1349_v31 }
 0x959   : > { %v1427_v33 = vpop.f32.mrb[20].mxu1 }
 0x95a   : > { %v1428_v18 = vadd.f32 %v1658_v32, %v1427_v33  ;;  %v1793_v34 = vpop.f32.mrb[21].mxu1 }
 0x95b   : > { %v1430_v35 = vpop.f32.mrb[22].mxu1 }
 0x95c   : > { %v1433_v36 = vmul.f32 %v1428_v18, %v1270_v3  ;;  %v1794_v37 = vpop.f32.mrb[23].mxu1 }
 0x95e   : > { %v1434_v38 = vadd.f32 %v1433_v36, %v1272_v9 }
 0x960   : > { %1435 = vst.msk [vmem:[%s575_s14] sm:$0xff] %vm692_vm5, %v1434_v38 }
 0x961   : > { %2179 = shalt.err (!%p2176_p13)
}
 0x962   : > { %s2180_s14 = scalar_lea.hbm %s2871_s8, 128  ;;  %s2184_s2 = scalar_lea.hbm %s3020_s6, 512 }
 0x963   : > { %p2181_p0 = scmp.ne.s32.totalorder %s2871_s8, %s2180_s14  ;;  %p2185_p10 = scmp.lt.u32.totalorder %s2871_s8, %s3020_s6 }
 0x964   : > { %p2186_p9 = scmp.lt.u32.totalorder %s2184_s2, %s2180_s14  ;;  %p2188_p12 = scmp.lt.u32.totalorder %s2180_s14, %s2871_s8 }
 0x965   : > { %p2182_p2 = pnand %p2181_p0, %p3022_p3 }
 0x966   : > { %p2187_p6 = por %p2186_p9, %p2185_p10 }
 0x967   : > { %p2183_p5 = pneg %p2182_p2 }
 0x968   : > { %p2189_p8 = por %p2188_p12, %p2187_p6 }
 0x96a   : > { %p2190_p7 = pnand %p2189_p8, %p2183_p5 }
 0x96c   : > { %2193 = shalt.err (!%p2190_p7)
}
 0x96d   : > { %1817 = dma.vmem_to_hbm [thread:$0]  (%p3022_p3), %s2873_s9, 128, %s2871_s8, %s1437_s28  }
 0x96e PF: > { %p1854_p4 = scmp.ge.s32.totalorder %s2300_s24, 2  ;;  %s1464_s4 = sand.u32 1, %s2260_s15  }
 0x96f   : > { %p3023_p11 = scmp.ne.s32.totalorder %s2999_s29, 0  ;;  %s1465_s21 = scalar_lea.sflag [#allocation8], %s1464_s4 }
 0x971   : > { %p1840_p1 = pnand %p1854_p4, %p3023_p11 }
 0x973   : > { %2255 = dma.done.wait (!%p1840_p1), %s1465_s21, 128  }
 0x974   : > { %2257 = vsyncadd (!%p1840_p1), %s1465_s21, 4294967168  ;;  %s34_s24 = sadd.s32 1, %s2300_s24   ;;  %s3024_s13 = sld [smem:[#allocation26_spill]] }
 0x975   : > { %p31_p13 = scmp.ge.s32.totalorder %s34_s24, 6   ;;  %s3025_s15 = smov %s2264_s16 }
 0x976   : > { %s3026_s16 = smov %s2268_s17  ;;  %s3027_s17 = smov %s2645_s12 }
 0x977   : > { %s3028_s18 = smov %s2276_s19  ;;  %s3029_s19 = smov %s2280_s20 }
 0x978   : > { %s3030_s20 = smov %s2642_s3  ;;  %s3031_s0 = smov %s2292_s22 }
 0x979   : > { %s3032_s21 = smov %s2296_s23  ;;  %s3033_s22 = smov %s3036_s25 }
 0x97a   : > { %s3034_s23 = smov %s3024_s13  ;;  %33 = sbr.rel (!%p31_p13) target bundleno = 28 (0x1c), region = 147 }
 0x981   :  { %1470 = vsyncpa [#allocation7], 1 }
 0x982   :  { %1472 = vsyncpa [#allocation7 + $0x1], 1 }
 0x983   :  { %1473 = vsyncpa [#allocation10], 1 }
 0x984   :  { %1474 = vsyncpa [#allocation13], 1 }
 0x985   :  { %1475 = vsyncpa [#allocation16], 1 }
 0x986   :  { %1476 = vsyncpa [#allocation8], 1 }
 0x987   :  { %1478 = vsyncpa [#allocation8 + $0x1], 1 }

</bundles_post_ra>
